<compile_context>
chip_gen: v7x
topology: tpu7x:2x2x1
jax: 0.10.0
libtpu: 0.0.40
codegen_flags: <defaults>
</compile_context>

<pallas_src>
import functools

import jax
import jax.numpy as jnp
from jax.experimental import pallas as pl
from jax.experimental.pallas import tpu as pltpu

SELU_ALPHA = 1.6732632423543772
SELU_SCALE = 1.0507009873554805
LANE = 128


def _round_up(n, m):
    return ((n + m - 1) // m) * m


def _selu(v):
    # Clamp before exp so the unselected branch of jnp.where never overflows.
    neg = SELU_ALPHA * (jnp.exp(jnp.minimum(v, 0.0)) - 1.0)
    return SELU_SCALE * jnp.where(v > 0, v, neg)


def _fused_autoencoder_kernel(*refs, n_layers, apply_last_act):
    """Whole forward (encoder + constrained decoder) for one batch tile.

    refs layout:
      x_ref,
      we_0..we_{L-1}   encoder weights, packed (Fin_pad, Fout_pad),
      wd_0..wd_{L-1}   decoder weights (constrained = reversed encoder weights,
                       already packed in the decoder orientation),
      eb_0..eb_{L-1}   encoder biases (1, Fout_pad) f32,
      db_0..db_{L-1}   decoder biases (1, Fout_pad) f32,
      o_ref.
    """
    x_ref = refs[0]
    we_refs = refs[1:1 + n_layers]
    wd_refs = refs[1 + n_layers:1 + 2 * n_layers]
    eb_refs = refs[1 + 2 * n_layers:1 + 3 * n_layers]
    db_refs = refs[1 + 3 * n_layers:1 + 4 * n_layers]
    o_ref = refs[1 + 4 * n_layers]

    mm_dtype = we_refs[0].dtype        # bf16 (MXU-native) or f32
    h = x_ref[...]                     # streamed in the matmul dtype already

    # ---- encoder:  h = selu(h @ W_i + b_i) ----
    for i in range(n_layers):
        y = jnp.dot(h.astype(mm_dtype), we_refs[i][...],
                    preferred_element_type=jnp.float32)
        h = _selu(y + eb_refs[i][...])

    # dropout(p=0.5) is identity in eval mode.
    # TODO(synk): training-mode stochastic dropout not implemented.

    # ---- decoder (constrained): plain NN matmuls against the pre-transposed
    #      reversed encoder weights (no in-kernel transpose) ----
    for ind in range(n_layers):
        y = jnp.dot(h.astype(mm_dtype), wd_refs[ind][...],
                    preferred_element_type=jnp.float32)
        y = y + db_refs[ind][...]
        h = _selu(y) if (ind != n_layers - 1 or apply_last_act) else y

    o_ref[...] = h.astype(o_ref.dtype)


def init_autoencoder_params(key, layer_sizes):
    """PyTorch-oriented params mirroring the nn.Module __init__ shapes.

    encode_w[i]: (layer_sizes[i+1], layer_sizes[i])  xavier_uniform
    encode_b[i]: (layer_sizes[i+1],)                 zeros
    decode_b[i]: (reversed_sizes[i+1],)              zeros
    """
    n_layers = len(layer_sizes) - 1
    keys = jax.random.split(key, n_layers)
    encode_w, encode_b = [], []
    for i in range(n_layers):
        fan_in, fan_out = layer_sizes[i], layer_sizes[i + 1]
        bound = (6.0 / (fan_in + fan_out)) ** 0.5
        w = jax.random.uniform(keys[i], (fan_out, fan_in), dtype=jnp.float32,
                               minval=-bound, maxval=bound)
        encode_w.append(w)
        encode_b.append(jnp.zeros((fan_out,), jnp.float32))
    rev = list(reversed(layer_sizes))
    decode_b = [jnp.zeros((rev[i + 1],), jnp.float32) for i in range(n_layers)]
    return encode_w, encode_b, decode_b


def prepare_params(encode_w, encode_b, decode_b, matmul_dtype=jnp.bfloat16):
    """One-time packing (NOT in the per-forward hot path):
       - encoder weights transposed to (Fin_pad, Fout_pad),
       - decoder weights packed separately in decoder orientation (so the
         constrained decoder never transposes in-kernel),
       - every feature dim zero-padded to a multiple of 128 (lane-dense tiles),
       - weights stored in the matmul dtype (bf16 halves weight HBM bytes)."""
    n_layers = len(encode_w)
    sizes = [encode_w[0].shape[1]] + [w.shape[0] for w in encode_w]
    padded = [_round_up(s, LANE) for s in sizes]

    we_list, wd_list, eb_list, db_list = [], [], [], []
    for i in range(n_layers):
        fin, fout = sizes[i], sizes[i + 1]
        pin, pout = padded[i], padded[i + 1]
        w = jnp.zeros((pin, pout), jnp.float32).at[:fin, :fout].set(encode_w[i].T)
        we_list.append(w.astype(matmul_dtype))
        eb = jnp.zeros((1, pout), jnp.float32).at[0, :fout].set(encode_b[i])
        eb_list.append(eb)

    # Constrained decoder layer `ind` computes z @ encode_w[n-1-ind] (PyTorch
    # orientation (out, in) already IS the decoder matmul RHS).
    for ind in range(n_layers):
        j = n_layers - 1 - ind
        fin, fout = sizes[j + 1], sizes[j]
        pin, pout = padded[j + 1], padded[j]
        wd = jnp.zeros((pin, pout), jnp.float32).at[:fin, :fout].set(encode_w[j])
        wd_list.append(wd.astype(matmul_dtype))
        db = jnp.zeros((1, pout), jnp.float32).at[0, :fout].set(decode_b[ind])
        db_list.append(db)
    return we_list, wd_list, eb_list, db_list


def autoencoder_forward(x, we_list, wd_list, eb_list, db_list, *,
                        out_features, last_layer_activations=True, tb=256,
                        out_dtype=jnp.float32, single_buffer_params=True):
    """Fused forward = decode(encode(x)) in one pallas_call.

    x: (B, F0) float. Returns (B, out_features) in `out_dtype`.
    tb: batch tile; 256 default (512 if VMEM allows on v5e/v6e).
    """
    B, F0 = x.shape
    n_layers = len(we_list)
    f0_pad = we_list[0].shape[0]
    assert F0 <= f0_pad, (F0, f0_pad)

    stream_dtype = we_list[0].dtype        # bf16 streaming on the bf16 path
    tb_eff = min(tb, _round_up(B, 8))
    b_pad = _round_up(B, tb_eff)

    # Zero-pad once: padded feature columns stay exactly zero through all
    # layers (selu(0) == 0); padded batch rows are sliced off at the end.
    x_pad = jnp.zeros((b_pad, f0_pad), stream_dtype).at[:B, :F0].set(
        x.astype(stream_dtype))

    grid = (b_pad // tb_eff,)
    in_specs = [pl.BlockSpec((tb_eff, f0_pad), lambda i: (i, 0))]
    params = we_list + wd_list + eb_list + db_list
    # Weights/biases: constant block index -> fetched once, VMEM-resident
    # across all batch tiles; single-buffered so they are not held twice.
    for p in params:
        if single_buffer_params:
            in_specs.append(pl.BlockSpec(p.shape, lambda i: (0, 0),
                                         pipeline_mode=pl.Buffered(1)))
        else:
            in_specs.append(pl.BlockSpec(p.shape, lambda i: (0, 0)))
    out_specs = pl.BlockSpec((tb_eff, f0_pad), lambda i: (i, 0))

    # VMEM budget: resident params (x1 or x2 buffers) + double-buffered
    # streamed x/out tiles + in-flight f32 activations + headroom, capped at
    # ~78% of this generation's physical VMEM.
    param_bytes = sum(int(p.size) * p.dtype.itemsize for p in params)
    param_bufs = 1 if single_buffer_params else 2
    max_fp = max(max(w.shape) for w in we_list + wd_list)
    stream_bytes = 2 * tb_eff * f0_pad * (
        jnp.dtype(stream_dtype).itemsize + jnp.dtype(out_dtype).itemsize)
    act_bytes = 4 * tb_eff * max_fp * 4
    vmem_needed = param_bufs * param_bytes + stream_bytes + act_bytes + (4 << 20)
    try:
        vmem_phys = int(pltpu.get_tpu_info().vmem_capacity_bytes)
    except Exception:
        vmem_phys = 128 << 20
    vmem_cap = int(vmem_phys * 0.78)       # ~50 MiB on v7x, ~100 MiB v5e/v6e
    vmem_limit = int(max(min(vmem_needed, vmem_cap), 16 << 20))

    out_pad = pl.pallas_call(
        functools.partial(_fused_autoencoder_kernel, n_layers=n_layers,
                          apply_last_act=last_layer_activations),
        out_shape=jax.ShapeDtypeStruct((b_pad, f0_pad), out_dtype),
        grid=grid,
        in_specs=in_specs,
        out_specs=out_specs,
        compiler_params=pltpu.CompilerParams(
            dimension_semantics=("parallel",),
            vmem_limit_bytes=vmem_limit),
    )(x_pad, *we_list, *wd_list, *eb_list, *db_list)

    return out_pad[:B, :out_features]


def _reference_forward(x, encode_w, encode_b, decode_b,
                       last_layer_activations=True, matmul_dtype=jnp.float32):
    """Pure-JAX reference (no Pallas), using the same matmul input dtype."""
    n_layers = len(encode_w)
    last = n_layers - 1
    h = x.astype(jnp.float32)
    for w, b in zip(encode_w, encode_b):
        y = jnp.dot(h.astype(matmul_dtype), w.T.astype(matmul_dtype),
                    preferred_element_type=jnp.float32) + b
        h = _selu(y)
    for ind, w in enumerate(reversed(encode_w)):
        y = jnp.dot(h.astype(matmul_dtype), w.astype(matmul_dtype),
                    preferred_element_type=jnp.float32) + decode_b[ind]
        h = _selu(y) if (ind != last or last_layer_activations) else y
    return h


if __name__ == "__main__":
    # layer_sizes[0] is the feature dim of x.
    layer_sizes = [64, 32, 16]   # encoder: 64->32->16 ; decoder: 16->32->64
    batch = 8

    key = jax.random.PRNGKey(0)
    k_params, k_x = jax.random.split(key)
    encode_w, encode_b, decode_b = init_autoencoder_params(k_params, layer_sizes)
    x = jax.random.normal(k_x, (batch, layer_sizes[0]), dtype=jnp.float32)

    fwd = jax.jit(autoencoder_forward,
                  static_argnames=("out_features", "last_layer_activations",
                                   "tb", "out_dtype", "single_buffer_params"))

    # ---- f32 matmul/stream path: tight check vs pure-JAX reference ----
    w32, wd32, eb32, db32 = prepare_params(encode_w, encode_b, decode_b,
                                           matmul_dtype=jnp.float32)
    try:
        out32 = jax.block_until_ready(
            fwd(x, w32, wd32, eb32, db32, out_features=layer_sizes[0],
                single_buffer_params=True))
        sb = True
    except Exception:
        # Fallback if this Pallas build rejects single-buffered params.
        sb = False
        out32 = jax.block_until_ready(
            fwd(x, w32, wd32, eb32, db32, out_features=layer_sizes[0],
                single_buffer_params=False))
    ref32 = _reference_forward(x, encode_w, encode_b, decode_b,
                               matmul_dtype=jnp.float32)
    assert out32.shape == (batch, layer_sizes[0]), out32.shape
    assert jnp.allclose(out32, ref32, atol=1e-4, rtol=1e-4), "f32 mismatch vs ref"

    # ---- bf16 matmul + bf16-streamed activations, f32 output ----
    wbf, wdbf, ebbf, dbbf = prepare_params(encode_w, encode_b, decode_b,
                                           matmul_dtype=jnp.bfloat16)
    outbf = jax.block_until_ready(
        fwd(x, wbf, wdbf, ebbf, dbbf, out_features=layer_sizes[0],
            single_buffer_params=sb))
    refbf = _reference_forward(x, encode_w, encode_b, decode_b,
                               matmul_dtype=jnp.bfloat16)
    assert outbf.shape == (batch, layer_sizes[0]), outbf.shape
    assert jnp.allclose(outbf, refbf, atol=2e-2, rtol=2e-2), "bf16 mismatch vs ref"

    # ---- fully bf16-streamed path (bf16 output) ----
    outbf16 = jax.block_until_ready(
        fwd(x, wbf, wdbf, ebbf, dbbf, out_features=layer_sizes[0],
            out_dtype=jnp.bfloat16, single_buffer_params=sb))
    assert outbf16.dtype == jnp.bfloat16, outbf16.dtype
    assert jnp.allclose(outbf16.astype(jnp.float32), refbf,
                        atol=3e-2, rtol=3e-2), "bf16-out mismatch vs ref"

    print("KERNEL_OK")
</pallas_src>

<mosaic_0001>
module attributes {stable_mosaic.version = 11 : i64} {
  func.func @_fused_autoencoder_kernel(%arg0: i32, %arg1: memref<8x128xf32, #tpu.memory_space<vmem>>, %arg2: memref<128x128xf32, #tpu.memory_space<vmem>>, %arg3: memref<128x128xf32, #tpu.memory_space<vmem>>, %arg4: memref<128x128xf32, #tpu.memory_space<vmem>>, %arg5: memref<128x128xf32, #tpu.memory_space<vmem>>, %arg6: memref<1x128xf32, #tpu.memory_space<vmem>>, %arg7: memref<1x128xf32, #tpu.memory_space<vmem>>, %arg8: memref<1x128xf32, #tpu.memory_space<vmem>>, %arg9: memref<1x128xf32, #tpu.memory_space<vmem>>, %arg10: memref<8x128xf32, #tpu.memory_space<vmem>>) attributes {dimension_semantics = [#tpu.dimension_semantics<parallel>], iteration_bounds = array<i64: 1>, scalar_prefetch = 0 : i64, scratch_operands = 0 : i64, tpu.core_type = #tpu.core_type<tc>, window_params = [{transform_indices = @transform_0, window_bounds = array<i64: 8, 128>}, {pipeline_mode = #tpu.pipeline_mode<synchronous>, transform_indices = @transform_1, window_bounds = array<i64: 128, 128>}, {pipeline_mode = #tpu.pipeline_mode<synchronous>, transform_indices = @transform_2, window_bounds = array<i64: 128, 128>}, {pipeline_mode = #tpu.pipeline_mode<synchronous>, transform_indices = @transform_3, window_bounds = array<i64: 128, 128>}, {pipeline_mode = #tpu.pipeline_mode<synchronous>, transform_indices = @transform_4, window_bounds = array<i64: 128, 128>}, {pipeline_mode = #tpu.pipeline_mode<synchronous>, transform_indices = @transform_5, window_bounds = array<i64: 1, 128>}, {pipeline_mode = #tpu.pipeline_mode<synchronous>, transform_indices = @transform_6, window_bounds = array<i64: 1, 128>}, {pipeline_mode = #tpu.pipeline_mode<synchronous>, transform_indices = @transform_7, window_bounds = array<i64: 1, 128>}, {pipeline_mode = #tpu.pipeline_mode<synchronous>, transform_indices = @transform_8, window_bounds = array<i64: 1, 128>}, {transform_indices = @transform_9, window_bounds = array<i64: 8, 128>}]} {
    %c0 = arith.constant 0 : index
    %c0_0 = arith.constant 0 : index
    %0 = vector.load %arg1[%c0, %c0_0] : memref<8x128xf32, #tpu.memory_space<vmem>>, vector<8x128xf32>
    %c0_1 = arith.constant 0 : index
    %c0_2 = arith.constant 0 : index
    %1 = vector.load %arg2[%c0_1, %c0_2] : memref<128x128xf32, #tpu.memory_space<vmem>>, vector<128x128xf32>
    %cst = arith.constant dense<0.000000e+00> : vector<8x128xf32>
    %2 = tpu.matmul %0, %1, %cst {dimension_numbers = #tpu.dot_dimension_numbers<[1], [0], [0], [1], [0, 0, 1, 1], [], []>} : vector<8x128xf32>, vector<128x128xf32>, vector<8x128xf32> -> vector<8x128xf32>
    %c0_3 = arith.constant 0 : index
    %c0_4 = arith.constant 0 : index
    %3 = vector.load %arg6[%c0_3, %c0_4] : memref<1x128xf32, #tpu.memory_space<vmem>>, vector<1x128xf32>
    %4 = vector.broadcast %3 : vector<1x128xf32> to vector<8x128xf32>
    %5 = arith.addf %2, %4 : vector<8x128xf32>
    %cst_5 = arith.constant 0.000000e+00 : f32
    %6 = vector.broadcast %cst_5 : f32 to vector<8x128xf32>
    %7 = arith.minimumf %5, %6 : vector<8x128xf32>
    %8 = math.exp %7 : vector<8x128xf32>
    %cst_6 = arith.constant 1.000000e+00 : f32
    %9 = vector.broadcast %cst_6 : f32 to vector<8x128xf32>
    %10 = arith.subf %8, %9 : vector<8x128xf32>
    %cst_7 = arith.constant 1.67326319 : f32
    %11 = vector.broadcast %cst_7 : f32 to vector<8x128xf32>
    %12 = arith.mulf %11, %10 : vector<8x128xf32>
    %cst_8 = arith.constant 0.000000e+00 : f32
    %13 = vector.broadcast %cst_8 : f32 to vector<8x128xf32>
    %14 = arith.cmpf ogt, %5, %13 : vector<8x128xf32>
    %15 = arith.select %14, %5, %12 : vector<8x128xi1>, vector<8x128xf32>
    %cst_9 = arith.constant 1.05070102 : f32
    %16 = vector.broadcast %cst_9 : f32 to vector<8x128xf32>
    %17 = arith.mulf %16, %15 : vector<8x128xf32>
    %c0_10 = arith.constant 0 : index
    %c0_11 = arith.constant 0 : index
    %18 = vector.load %arg3[%c0_10, %c0_11] : memref<128x128xf32, #tpu.memory_space<vmem>>, vector<128x128xf32>
    %cst_12 = arith.constant dense<0.000000e+00> : vector<8x128xf32>
    %19 = tpu.matmul %17, %18, %cst_12 {dimension_numbers = #tpu.dot_dimension_numbers<[1], [0], [0], [1], [0, 0, 1, 1], [], []>} : vector<8x128xf32>, vector<128x128xf32>, vector<8x128xf32> -> vector<8x128xf32>
    %c0_13 = arith.constant 0 : index
    %c0_14 = arith.constant 0 : index
    %20 = vector.load %arg7[%c0_13, %c0_14] : memref<1x128xf32, #tpu.memory_space<vmem>>, vector<1x128xf32>
    %21 = vector.broadcast %20 : vector<1x128xf32> to vector<8x128xf32>
    %22 = arith.addf %19, %21 : vector<8x128xf32>
    %cst_15 = arith.constant 0.000000e+00 : f32
    %23 = vector.broadcast %cst_15 : f32 to vector<8x128xf32>
    %24 = arith.minimumf %22, %23 : vector<8x128xf32>
    %25 = math.exp %24 : vector<8x128xf32>
    %cst_16 = arith.constant 1.000000e+00 : f32
    %26 = vector.broadcast %cst_16 : f32 to vector<8x128xf32>
    %27 = arith.subf %25, %26 : vector<8x128xf32>
    %cst_17 = arith.constant 1.67326319 : f32
    %28 = vector.broadcast %cst_17 : f32 to vector<8x128xf32>
    %29 = arith.mulf %28, %27 : vector<8x128xf32>
    %cst_18 = arith.constant 0.000000e+00 : f32
    %30 = vector.broadcast %cst_18 : f32 to vector<8x128xf32>
    %31 = arith.cmpf ogt, %22, %30 : vector<8x128xf32>
    %32 = arith.select %31, %22, %29 : vector<8x128xi1>, vector<8x128xf32>
    %cst_19 = arith.constant 1.05070102 : f32
    %33 = vector.broadcast %cst_19 : f32 to vector<8x128xf32>
    %34 = arith.mulf %33, %32 : vector<8x128xf32>
    %c0_20 = arith.constant 0 : index
    %c0_21 = arith.constant 0 : index
    %35 = vector.load %arg4[%c0_20, %c0_21] : memref<128x128xf32, #tpu.memory_space<vmem>>, vector<128x128xf32>
    %cst_22 = arith.constant dense<0.000000e+00> : vector<8x128xf32>
    %36 = tpu.matmul %34, %35, %cst_22 {dimension_numbers = #tpu.dot_dimension_numbers<[1], [0], [0], [1], [0, 0, 1, 1], [], []>} : vector<8x128xf32>, vector<128x128xf32>, vector<8x128xf32> -> vector<8x128xf32>
    %c0_23 = arith.constant 0 : index
    %c0_24 = arith.constant 0 : index
    %37 = vector.load %arg8[%c0_23, %c0_24] : memref<1x128xf32, #tpu.memory_space<vmem>>, vector<1x128xf32>
    %38 = vector.broadcast %37 : vector<1x128xf32> to vector<8x128xf32>
    %39 = arith.addf %36, %38 : vector<8x128xf32>
    %cst_25 = arith.constant 0.000000e+00 : f32
    %40 = vector.broadcast %cst_25 : f32 to vector<8x128xf32>
    %41 = arith.minimumf %39, %40 : vector<8x128xf32>
    %42 = math.exp %41 : vector<8x128xf32>
    %cst_26 = arith.constant 1.000000e+00 : f32
    %43 = vector.broadcast %cst_26 : f32 to vector<8x128xf32>
    %44 = arith.subf %42, %43 : vector<8x128xf32>
    %cst_27 = arith.constant 1.67326319 : f32
    %45 = vector.broadcast %cst_27 : f32 to vector<8x128xf32>
    %46 = arith.mulf %45, %44 : vector<8x128xf32>
    %cst_28 = arith.constant 0.000000e+00 : f32
    %47 = vector.broadcast %cst_28 : f32 to vector<8x128xf32>
    %48 = arith.cmpf ogt, %39, %47 : vector<8x128xf32>
    %49 = arith.select %48, %39, %46 : vector<8x128xi1>, vector<8x128xf32>
    %cst_29 = arith.constant 1.05070102 : f32
    %50 = vector.broadcast %cst_29 : f32 to vector<8x128xf32>
    %51 = arith.mulf %50, %49 : vector<8x128xf32>
    %c0_30 = arith.constant 0 : index
    %c0_31 = arith.constant 0 : index
    %52 = vector.load %arg5[%c0_30, %c0_31] : memref<128x128xf32, #tpu.memory_space<vmem>>, vector<128x128xf32>
    %cst_32 = arith.constant dense<0.000000e+00> : vector<8x128xf32>
    %53 = tpu.matmul %51, %52, %cst_32 {dimension_numbers = #tpu.dot_dimension_numbers<[1], [0], [0], [1], [0, 0, 1, 1], [], []>} : vector<8x128xf32>, vector<128x128xf32>, vector<8x128xf32> -> vector<8x128xf32>
    %c0_33 = arith.constant 0 : index
    %c0_34 = arith.constant 0 : index
    %54 = vector.load %arg9[%c0_33, %c0_34] : memref<1x128xf32, #tpu.memory_space<vmem>>, vector<1x128xf32>
    %55 = vector.broadcast %54 : vector<1x128xf32> to vector<8x128xf32>
    %56 = arith.addf %53, %55 : vector<8x128xf32>
    %cst_35 = arith.constant 0.000000e+00 : f32
    %57 = vector.broadcast %cst_35 : f32 to vector<8x128xf32>
    %58 = arith.minimumf %56, %57 : vector<8x128xf32>
    %59 = math.exp %58 : vector<8x128xf32>
    %cst_36 = arith.constant 1.000000e+00 : f32
    %60 = vector.broadcast %cst_36 : f32 to vector<8x128xf32>
    %61 = arith.subf %59, %60 : vector<8x128xf32>
    %cst_37 = arith.constant 1.67326319 : f32
    %62 = vector.broadcast %cst_37 : f32 to vector<8x128xf32>
    %63 = arith.mulf %62, %61 : vector<8x128xf32>
    %cst_38 = arith.constant 0.000000e+00 : f32
    %64 = vector.broadcast %cst_38 : f32 to vector<8x128xf32>
    %65 = arith.cmpf ogt, %56, %64 : vector<8x128xf32>
    %66 = arith.select %65, %56, %63 : vector<8x128xi1>, vector<8x128xf32>
    %cst_39 = arith.constant 1.05070102 : f32
    %67 = vector.broadcast %cst_39 : f32 to vector<8x128xf32>
    %68 = arith.mulf %67, %66 : vector<8x128xf32>
    %c0_40 = arith.constant 0 : index
    %c0_41 = arith.constant 0 : index
    %69 = vector.load %arg10[%c0_40, %c0_41] : memref<8x128xf32, #tpu.memory_space<vmem>>, vector<8x128xf32>
    tpu.vector_store %arg10[%c0_40, %c0_41], %68 {strides = array<i32>} : memref<8x128xf32, #tpu.memory_space<vmem>>, vector<8x128xf32>,
    return
  }
  func.func @transform_0(%arg0: i32) -> (i32, i32) {
    %c0_i32 = arith.constant 0 : i32
    %c0_i32_0 = arith.constant 0 : i32
    return %arg0, %c0_i32 : i32, i32
  }
  func.func @transform_1(%arg0: i32) -> (i32, i32) {
    %c0_i32 = arith.constant 0 : i32
    %c0_i32_0 = arith.constant 0 : i32
    %c0_i32_1 = arith.constant 0 : i32
    return %c0_i32, %c0_i32_0 : i32, i32
  }
  func.func @transform_2(%arg0: i32) -> (i32, i32) {
    %c0_i32 = arith.constant 0 : i32
    %c0_i32_0 = arith.constant 0 : i32
    %c0_i32_1 = arith.constant 0 : i32
    return %c0_i32, %c0_i32_0 : i32, i32
  }
  func.func @transform_3(%arg0: i32) -> (i32, i32) {
    %c0_i32 = arith.constant 0 : i32
    %c0_i32_0 = arith.constant 0 : i32
    %c0_i32_1 = arith.constant 0 : i32
    return %c0_i32, %c0_i32_0 : i32, i32
  }
  func.func @transform_4(%arg0: i32) -> (i32, i32) {
    %c0_i32 = arith.constant 0 : i32
    %c0_i32_0 = arith.constant 0 : i32
    %c0_i32_1 = arith.constant 0 : i32
    return %c0_i32, %c0_i32_0 : i32, i32
  }
  func.func @transform_5(%arg0: i32) -> (i32, i32) {
    %c0_i32 = arith.constant 0 : i32
    %c0_i32_0 = arith.constant 0 : i32
    %c0_i32_1 = arith.constant 0 : i32
    return %c0_i32, %c0_i32_0 : i32, i32
  }
  func.func @transform_6(%arg0: i32) -> (i32, i32) {
    %c0_i32 = arith.constant 0 : i32
    %c0_i32_0 = arith.constant 0 : i32
    %c0_i32_1 = arith.constant 0 : i32
    return %c0_i32, %c0_i32_0 : i32, i32
  }
  func.func @transform_7(%arg0: i32) -> (i32, i32) {
    %c0_i32 = arith.constant 0 : i32
    %c0_i32_0 = arith.constant 0 : i32
    %c0_i32_1 = arith.constant 0 : i32
    return %c0_i32, %c0_i32_0 : i32, i32
  }
  func.func @transform_8(%arg0: i32) -> (i32, i32) {
    %c0_i32 = arith.constant 0 : i32
    %c0_i32_0 = arith.constant 0 : i32
    %c0_i32_1 = arith.constant 0 : i32
    return %c0_i32, %c0_i32_0 : i32, i32
  }
  func.func @transform_9(%arg0: i32) -> (i32, i32) {
    %c0_i32 = arith.constant 0 : i32
    %c0_i32_0 = arith.constant 0 : i32
    return %arg0, %c0_i32 : i32, i32
  }
}

module attributes {stable_mosaic.version = 11 : i64} {
  func.func @_fused_autoencoder_kernel(%arg0: i32, %arg1: memref<8x128xf32, #tpu.memory_space<vmem>>, %arg2: memref<128x128xf32, #tpu.memory_space<vmem>>, %arg3: memref<128x128xf32, #tpu.memory_space<vmem>>, %arg4: memref<128x128xf32, #tpu.memory_space<vmem>>, %arg5: memref<128x128xf32, #tpu.memory_space<vmem>>, %arg6: memref<1x128xf32, #tpu.memory_space<vmem>>, %arg7: memref<1x128xf32, #tpu.memory_space<vmem>>, %arg8: memref<1x128xf32, #tpu.memory_space<vmem>>, %arg9: memref<1x128xf32, #tpu.memory_space<vmem>>, %arg10: memref<8x128xf32, #tpu.memory_space<vmem>>) attributes {dimension_semantics = [#tpu.dimension_semantics<parallel>], iteration_bounds = array<i64: 1>, scalar_prefetch = 0 : i64, scratch_operands = 0 : i64, tpu.core_type = #tpu.core_type<tc>, window_params = [{transform_indices = @transform_0, window_bounds = array<i64: 8, 128>}, {pipeline_mode = #tpu.pipeline_mode<synchronous>, transform_indices = @transform_1, window_bounds = array<i64: 128, 128>}, {pipeline_mode = #tpu.pipeline_mode<synchronous>, transform_indices = @transform_2, window_bounds = array<i64: 128, 128>}, {pipeline_mode = #tpu.pipeline_mode<synchronous>, transform_indices = @transform_3, window_bounds = array<i64: 128, 128>}, {pipeline_mode = #tpu.pipeline_mode<synchronous>, transform_indices = @transform_4, window_bounds = array<i64: 128, 128>}, {pipeline_mode = #tpu.pipeline_mode<synchronous>, transform_indices = @transform_5, window_bounds = array<i64: 1, 128>}, {pipeline_mode = #tpu.pipeline_mode<synchronous>, transform_indices = @transform_6, window_bounds = array<i64: 1, 128>}, {pipeline_mode = #tpu.pipeline_mode<synchronous>, transform_indices = @transform_7, window_bounds = array<i64: 1, 128>}, {pipeline_mode = #tpu.pipeline_mode<synchronous>, transform_indices = @transform_8, window_bounds = array<i64: 1, 128>}, {transform_indices = @transform_9, window_bounds = array<i64: 8, 128>}]} {
    %c0 = arith.constant 0 : index
    %c0_0 = arith.constant 0 : index
    %0 = vector.load %arg1[%c0, %c0_0] : memref<8x128xf32, #tpu.memory_space<vmem>>, vector<8x128xf32>
    %c0_1 = arith.constant 0 : index
    %c0_2 = arith.constant 0 : index
    %1 = vector.load %arg2[%c0_1, %c0_2] : memref<128x128xf32, #tpu.memory_space<vmem>>, vector<128x128xf32>
    %cst = arith.constant dense<0.000000e+00> : vector<8x128xf32>
    %2 = tpu.matmul %0, %1, %cst {dimension_numbers = #tpu.dot_dimension_numbers<[1], [0], [0], [1], [0, 0, 1, 1], [], []>} : vector<8x128xf32>, vector<128x128xf32>, vector<8x128xf32> -> vector<8x128xf32>
    %c0_3 = arith.constant 0 : index
    %c0_4 = arith.constant 0 : index
    %3 = vector.load %arg6[%c0_3, %c0_4] : memref<1x128xf32, #tpu.memory_space<vmem>>, vector<1x128xf32>
    %4 = vector.broadcast %3 : vector<1x128xf32> to vector<8x128xf32>
    %5 = arith.addf %2, %4 : vector<8x128xf32>
    %cst_5 = arith.constant 0.000000e+00 : f32
    %6 = vector.broadcast %cst_5 : f32 to vector<8x128xf32>
    %7 = arith.minimumf %5, %6 : vector<8x128xf32>
    %8 = math.exp %7 : vector<8x128xf32>
    %cst_6 = arith.constant 1.000000e+00 : f32
    %9 = vector.broadcast %cst_6 : f32 to vector<8x128xf32>
    %10 = arith.subf %8, %9 : vector<8x128xf32>
    %cst_7 = arith.constant 1.67326319 : f32
    %11 = vector.broadcast %cst_7 : f32 to vector<8x128xf32>
    %12 = arith.mulf %11, %10 : vector<8x128xf32>
    %cst_8 = arith.constant 0.000000e+00 : f32
    %13 = vector.broadcast %cst_8 : f32 to vector<8x128xf32>
    %14 = arith.cmpf ogt, %5, %13 : vector<8x128xf32>
    %15 = arith.select %14, %5, %12 : vector<8x128xi1>, vector<8x128xf32>
    %cst_9 = arith.constant 1.05070102 : f32
    %16 = vector.broadcast %cst_9 : f32 to vector<8x128xf32>
    %17 = arith.mulf %16, %15 : vector<8x128xf32>
    %c0_10 = arith.constant 0 : index
    %c0_11 = arith.constant 0 : index
    %18 = vector.load %arg3[%c0_10, %c0_11] : memref<128x128xf32, #tpu.memory_space<vmem>>, vector<128x128xf32>
    %cst_12 = arith.constant dense<0.000000e+00> : vector<8x128xf32>
    %19 = tpu.matmul %17, %18, %cst_12 {dimension_numbers = #tpu.dot_dimension_numbers<[1], [0], [0], [1], [0, 0, 1, 1], [], []>} : vector<8x128xf32>, vector<128x128xf32>, vector<8x128xf32> -> vector<8x128xf32>
    %c0_13 = arith.constant 0 : index
    %c0_14 = arith.constant 0 : index
    %20 = vector.load %arg7[%c0_13, %c0_14] : memref<1x128xf32, #tpu.memory_space<vmem>>, vector<1x128xf32>
    %21 = vector.broadcast %20 : vector<1x128xf32> to vector<8x128xf32>
    %22 = arith.addf %19, %21 : vector<8x128xf32>
    %cst_15 = arith.constant 0.000000e+00 : f32
    %23 = vector.broadcast %cst_15 : f32 to vector<8x128xf32>
    %24 = arith.minimumf %22, %23 : vector<8x128xf32>
    %25 = math.exp %24 : vector<8x128xf32>
    %cst_16 = arith.constant 1.000000e+00 : f32
    %26 = vector.broadcast %cst_16 : f32 to vector<8x128xf32>
    %27 = arith.subf %25, %26 : vector<8x128xf32>
    %cst_17 = arith.constant 1.67326319 : f32
    %28 = vector.broadcast %cst_17 : f32 to vector<8x128xf32>
    %29 = arith.mulf %28, %27 : vector<8x128xf32>
    %cst_18 = arith.constant 0.000000e+00 : f32
    %30 = vector.broadcast %cst_18 : f32 to vector<8x128xf32>
    %31 = arith.cmpf ogt, %22, %30 : vector<8x128xf32>
    %32 = arith.select %31, %22, %29 : vector<8x128xi1>, vector<8x128xf32>
    %cst_19 = arith.constant 1.05070102 : f32
    %33 = vector.broadcast %cst_19 : f32 to vector<8x128xf32>
    %34 = arith.mulf %33, %32 : vector<8x128xf32>
    %c0_20 = arith.constant 0 : index
    %c0_21 = arith.constant 0 : index
    %35 = vector.load %arg4[%c0_20, %c0_21] : memref<128x128xf32, #tpu.memory_space<vmem>>, vector<128x128xf32>
    %cst_22 = arith.constant dense<0.000000e+00> : vector<8x128xf32>
    %36 = tpu.matmul %34, %35, %cst_22 {dimension_numbers = #tpu.dot_dimension_numbers<[1], [0], [0], [1], [0, 0, 1, 1], [], []>} : vector<8x128xf32>, vector<128x128xf32>, vector<8x128xf32> -> vector<8x128xf32>
    %c0_23 = arith.constant 0 : index
    %c0_24 = arith.constant 0 : index
    %37 = vector.load %arg8[%c0_23, %c0_24] : memref<1x128xf32, #tpu.memory_space<vmem>>, vector<1x128xf32>
    %38 = vector.broadcast %37 : vector<1x128xf32> to vector<8x128xf32>
    %39 = arith.addf %36, %38 : vector<8x128xf32>
    %cst_25 = arith.constant 0.000000e+00 : f32
    %40 = vector.broadcast %cst_25 : f32 to vector<8x128xf32>
    %41 = arith.minimumf %39, %40 : vector<8x128xf32>
    %42 = math.exp %41 : vector<8x128xf32>
    %cst_26 = arith.constant 1.000000e+00 : f32
    %43 = vector.broadcast %cst_26 : f32 to vector<8x128xf32>
    %44 = arith.subf %42, %43 : vector<8x128xf32>
    %cst_27 = arith.constant 1.67326319 : f32
    %45 = vector.broadcast %cst_27 : f32 to vector<8x128xf32>
    %46 = arith.mulf %45, %44 : vector<8x128xf32>
    %cst_28 = arith.constant 0.000000e+00 : f32
    %47 = vector.broadcast %cst_28 : f32 to vector<8x128xf32>
    %48 = arith.cmpf ogt, %39, %47 : vector<8x128xf32>
    %49 = arith.select %48, %39, %46 : vector<8x128xi1>, vector<8x128xf32>
    %cst_29 = arith.constant 1.05070102 : f32
    %50 = vector.broadcast %cst_29 : f32 to vector<8x128xf32>
    %51 = arith.mulf %50, %49 : vector<8x128xf32>
    %c0_30 = arith.constant 0 : index
    %c0_31 = arith.constant 0 : index
    %52 = vector.load %arg5[%c0_30, %c0_31] : memref<128x128xf32, #tpu.memory_space<vmem>>, vector<128x128xf32>
    %cst_32 = arith.constant dense<0.000000e+00> : vector<8x128xf32>
    %53 = tpu.matmul %51, %52, %cst_32 {dimension_numbers = #tpu.dot_dimension_numbers<[1], [0], [0], [1], [0, 0, 1, 1], [], []>} : vector<8x128xf32>, vector<128x128xf32>, vector<8x128xf32> -> vector<8x128xf32>
    %c0_33 = arith.constant 0 : index
    %c0_34 = arith.constant 0 : index
    %54 = vector.load %arg9[%c0_33, %c0_34] : memref<1x128xf32, #tpu.memory_space<vmem>>, vector<1x128xf32>
    %55 = vector.broadcast %54 : vector<1x128xf32> to vector<8x128xf32>
    %56 = arith.addf %53, %55 : vector<8x128xf32>
    %cst_35 = arith.constant 0.000000e+00 : f32
    %57 = vector.broadcast %cst_35 : f32 to vector<8x128xf32>
    %58 = arith.minimumf %56, %57 : vector<8x128xf32>
    %59 = math.exp %58 : vector<8x128xf32>
    %cst_36 = arith.constant 1.000000e+00 : f32
    %60 = vector.broadcast %cst_36 : f32 to vector<8x128xf32>
    %61 = arith.subf %59, %60 : vector<8x128xf32>
    %cst_37 = arith.constant 1.67326319 : f32
    %62 = vector.broadcast %cst_37 : f32 to vector<8x128xf32>
    %63 = arith.mulf %62, %61 : vector<8x128xf32>
    %cst_38 = arith.constant 0.000000e+00 : f32
    %64 = vector.broadcast %cst_38 : f32 to vector<8x128xf32>
    %65 = arith.cmpf ogt, %56, %64 : vector<8x128xf32>
    %66 = arith.select %65, %56, %63 : vector<8x128xi1>, vector<8x128xf32>
    %cst_39 = arith.constant 1.05070102 : f32
    %67 = vector.broadcast %cst_39 : f32 to vector<8x128xf32>
    %68 = arith.mulf %67, %66 : vector<8x128xf32>
    %c0_40 = arith.constant 0 : index
    %c0_41 = arith.constant 0 : index
    %69 = vector.load %arg10[%c0_40, %c0_41] : memref<8x128xf32, #tpu.memory_space<vmem>>, vector<8x128xf32>
    tpu.vector_store %arg10[%c0_40, %c0_41], %68 {strides = array<i32>} : memref<8x128xf32, #tpu.memory_space<vmem>>, vector<8x128xf32>,
    return
  }
  func.func @transform_0(%arg0: i32) -> (i32, i32) {
    %c0_i32 = arith.constant 0 : i32
    %c0_i32_0 = arith.constant 0 : i32
    return %arg0, %c0_i32 : i32, i32
  }
  func.func @transform_1(%arg0: i32) -> (i32, i32) {
    %c0_i32 = arith.constant 0 : i32
    %c0_i32_0 = arith.constant 0 : i32
    %c0_i32_1 = arith.constant 0 : i32
    return %c0_i32, %c0_i32_0 : i32, i32
  }
  func.func @transform_2(%arg0: i32) -> (i32, i32) {
    %c0_i32 = arith.constant 0 : i32
    %c0_i32_0 = arith.constant 0 : i32
    %c0_i32_1 = arith.constant 0 : i32
    return %c0_i32, %c0_i32_0 : i32, i32
  }
  func.func @transform_3(%arg0: i32) -> (i32, i32) {
    %c0_i32 = arith.constant 0 : i32
    %c0_i32_0 = arith.constant 0 : i32
    %c0_i32_1 = arith.constant 0 : i32
    return %c0_i32, %c0_i32_0 : i32, i32
  }
  func.func @transform_4(%arg0: i32) -> (i32, i32) {
    %c0_i32 = arith.constant 0 : i32
    %c0_i32_0 = arith.constant 0 : i32
    %c0_i32_1 = arith.constant 0 : i32
    return %c0_i32, %c0_i32_0 : i32, i32
  }
  func.func @transform_5(%arg0: i32) -> (i32, i32) {
    %c0_i32 = arith.constant 0 : i32
    %c0_i32_0 = arith.constant 0 : i32
    %c0_i32_1 = arith.constant 0 : i32
    return %c0_i32, %c0_i32_0 : i32, i32
  }
  func.func @transform_6(%arg0: i32) -> (i32, i32) {
    %c0_i32 = arith.constant 0 : i32
    %c0_i32_0 = arith.constant 0 : i32
    %c0_i32_1 = arith.constant 0 : i32
    return %c0_i32, %c0_i32_0 : i32, i32
  }
  func.func @transform_7(%arg0: i32) -> (i32, i32) {
    %c0_i32 = arith.constant 0 : i32
    %c0_i32_0 = arith.constant 0 : i32
    %c0_i32_1 = arith.constant 0 : i32
    return %c0_i32, %c0_i32_0 : i32, i32
  }
  func.func @transform_8(%arg0: i32) -> (i32, i32) {
    %c0_i32 = arith.constant 0 : i32
    %c0_i32_0 = arith.constant 0 : i32
    %c0_i32_1 = arith.constant 0 : i32
    return %c0_i32, %c0_i32_0 : i32, i32
  }
  func.func @transform_9(%arg0: i32) -> (i32, i32) {
    %c0_i32 = arith.constant 0 : i32
    %c0_i32_0 = arith.constant 0 : i32
    return %arg0, %c0_i32 : i32, i32
  }
}

</mosaic_0001>

<bundles_post_ra>
// kernel: autoencoder_forward.1
= control target key start
LH: loop header
LB: loop body
LE: loop exit
PB: predicated region body
PF: predicated region fallthrough
CT: control target
= control target key end

     0   :  { %14 = vsyncpa [#allocation3], 0  ;;  %s1160_s0 = inlined_call_operand.vmem [shape: f32[8,128], index: 0, kind: input, shape index: {}]   ;;  %s1161_s1 = inlined_call_operand.hbm [shape: f32[128,128], index: 1, kind: input, shape index: {}]   ;;  %s1162_s2 = inlined_call_operand.hbm [shape: f32[128,128], index: 2, kind: input, shape index: {}]   ;;  %s1163_s3 = inlined_call_operand.hbm [shape: f32[128,128], index: 3, kind: input, shape index: {}]   ;;  %s1164_s4 = inlined_call_operand.hbm [shape: f32[128,128], index: 4, kind: input, shape index: {}]   ;;  %s1165_s5 = inlined_call_operand.vmem [shape: f32[1,128], index: 5, kind: input, shape index: {}]   ;;  %s1166_s6 = inlined_call_operand.vmem [shape: f32[1,128], index: 6, kind: input, shape index: {}]   ;;  %s1167_s7 = inlined_call_operand.vmem [shape: f32[1,128], index: 7, kind: input, shape index: {}]   ;;  %s1168_s8 = inlined_call_operand.vmem [shape: f32[1,128], index: 8, kind: input, shape index: {}]   ;;  %s1169_s9 = inlined_call_operand.hbm [shape: f32[8,128], index: 9, kind: output, shape index: {}]  }
   0x1   :  { %15 = vsyncpa [#allocation6], 0 }
   0x2   :  { %16 = vsyncpa [#allocation9], 0 }
   0x3   :  { %17 = vsyncpa [#allocation4], 0  ;;  %s959_s30 = smov [#allocation5]   ;;  %s960_s11 = smov [#allocation2]  }
   0x4   :  { %s37_s10 = sshll.u32 %s959_s30, 4  ;;  %s25_s12 = sshll.u32 %s960_s11, 4  ;;  %s38_s10 = int_to_ptr.vmem [resolvable:$true] %s37_s10  ;;  %s1019_s12 = int_to_ptr.vmem [resolvable:$true] %s25_s12 }
   0x5   :  { %s841_s15 = scalar_lea.hbm %s1162_s2, 2048 }
   0x6   :  { %p842_p0 = scmp.ne.s32.totalorder %s1162_s2, %s841_s15  ;;  %p845_p1 = scmp.lt.u32.totalorder %s841_s15, %s1162_s2 }
   0x8   :  { %p847_p2 = pnand %p845_p1, %p842_p0 }
   0xa   :  { %850 = shalt.err (!%p847_p2)
}
   0xb   :  { %s851_s20 = scalar_lea.vmem %s38_s10, 2048  ;;  %p856_p4 = scmp.lt.s32.totalorder %s38_s10, %s38_s10 }
   0xc   :  { %p852_p3 = scmp.ne.s32.totalorder %s38_s10, %s851_s20  ;;  %p857_p5 = scmp.lt.s32.totalorder %s851_s20, %s851_s20 }
   0xe   :  { %p858_p6 = por %p857_p5, %p856_p4 }
  0x10   :  { %p859_p7 = pnand %p858_p6, %p852_p3 }
  0x12   :  { %862 = shalt.err (!%p859_p7)
}
  0x13   :  { %s961_s21 = smov 128   ;;  %s962_s22 = smov 8  }
  0x14   :  { %43 = dma.hbm_to_vmem [thread:$0]  %s1162_s2, 2048, %s38_s10, [#allocation6], %s961_s21, %s961_s21, %s962_s22  }
  0x15   :  { %s863_s27 = scalar_lea.hbm %s1161_s1, 2048 }
  0x16   :  { %p864_p8 = scmp.ne.s32.totalorder %s1161_s1, %s863_s27  ;;  %p867_p9 = scmp.lt.u32.totalorder %s863_s27, %s1161_s1 }
  0x18   :  { %p869_p10 = pnand %p867_p9, %p864_p8 }
  0x1a   :  { %872 = shalt.err (!%p869_p10)
}
  0x1b   :  { %s873_s13 = scalar_lea.vmem %s1019_s12, 2048  ;;  %p878_p12 = scmp.lt.s32.totalorder %s1019_s12, %s1019_s12 }
  0x1c   :  { %p874_p11 = scmp.ne.s32.totalorder %s1019_s12, %s873_s13  ;;  %p879_p13 = scmp.lt.s32.totalorder %s873_s13, %s873_s13 }
  0x1e   :  { %p880_p0 = por %p879_p13, %p878_p12 }
  0x20   :  { %p881_p1 = pnand %p880_p0, %p874_p11 }
  0x22   :  { %884 = shalt.err (!%p881_p1)
}
  0x23   :  { %31 = dma.hbm_to_vmem [thread:$0]  %s1161_s1, 2048, %s1019_s12, [#allocation3], %s961_s21, %s961_s21, %s962_s22  }
  0x24   :  { %s963_s14 = smov [#allocation7]   ;;  %s964_s16 = smov [#allocation8]  }
  0x25   :  { %s49_s15 = sshll.u32 %s963_s14, 4  ;;  %s61_s17 = sshll.u32 %s964_s16, 4  ;;  %s50_s15 = int_to_ptr.vmem [resolvable:$true] %s49_s15  ;;  %s1056_s17 = int_to_ptr.vmem [resolvable:$true] %s61_s17 }
  0x26   :  { %s885_s20 = scalar_lea.hbm %s1163_s3, 2048 }
  0x27   :  { %p886_p2 = scmp.ne.s32.totalorder %s1163_s3, %s885_s20  ;;  %p889_p3 = scmp.lt.u32.totalorder %s885_s20, %s1163_s3 }
  0x29   :  { %p891_p4 = pnand %p889_p3, %p886_p2 }
  0x2b   :  { %894 = shalt.err (!%p891_p4)
}
  0x2c   :  { %s895_s1 = scalar_lea.vmem %s50_s15, 2048  ;;  %p900_p6 = scmp.lt.s32.totalorder %s50_s15, %s50_s15 }
  0x2d   :  { %p896_p5 = scmp.ne.s32.totalorder %s50_s15, %s895_s1  ;;  %p901_p7 = scmp.lt.s32.totalorder %s895_s1, %s895_s1 }
  0x2f   :  { %p902_p8 = por %p901_p7, %p900_p6 }
  0x31   :  { %p903_p9 = pnand %p902_p8, %p896_p5 }
  0x33   :  { %906 = shalt.err (!%p903_p9)
}
  0x34   :  { %55 = dma.hbm_to_vmem [thread:$0]  %s1163_s3, 2048, %s50_s15, [#allocation6], %s961_s21, %s961_s21, %s962_s22  }
  0x35   :  { %s907_s30 = scalar_lea.hbm %s1164_s4, 2048 }
  0x36   :  { %p908_p10 = scmp.ne.s32.totalorder %s1164_s4, %s907_s30  ;;  %p911_p11 = scmp.lt.u32.totalorder %s907_s30, %s1164_s4 }
  0x38   :  { %p913_p12 = pnand %p911_p11, %p908_p10 }
  0x3a   :  { %916 = shalt.err (!%p913_p12)
}
  0x3b   :  { %s917_s14 = scalar_lea.vmem %s1056_s17, 2048  ;;  %p922_p0 = scmp.lt.s32.totalorder %s1056_s17, %s1056_s17 }
  0x3c   :  { %p918_p13 = scmp.ne.s32.totalorder %s1056_s17, %s917_s14  ;;  %p923_p1 = scmp.lt.s32.totalorder %s917_s14, %s917_s14 }
  0x3e   :  { %p924_p2 = por %p923_p1, %p922_p0 }
  0x40   :  { %p925_p3 = pnand %p924_p2, %p918_p13 }
  0x42   :  { %928 = shalt.err (!%p925_p3)
}
  0x43   :  { %67 = dma.hbm_to_vmem [thread:$0]  %s1164_s4, 2048, %s1056_s17, [#allocation9], %s961_s21, %s961_s21, %s962_s22  }
  0x44   :  { %951 = dma.done.wait [#allocation3], 2048  }
  0x45   :  { %952 = vsyncadd [#allocation3], 4294965248 }
  0x46   :  { %953 = dma.done.wait [#allocation6], 4096  }
  0x47   :  { %954 = vsyncadd [#allocation6], 4294963200 }
  0x48   :  { %955 = dma.done.wait [#allocation9], 2048  }
  0x49   :  { %956 = vsyncadd [#allocation9], 4294965248  ;;  %v965_v0 = vmov 0.0|0.0   ;;  %vm966_vm0 = vmmov 0   ;;  %v967_v1 = vmov 0.0   ;;  %v89_v2 = vld [vmem:[#allocation2] sm:$0xff] }
  0x4a   :  { %727 = vmatprep.subr.bf16.mxu0 %v965_v0  ;;  %619 = vmatprep.mubr.msk.f32.mxu0 %vm966_vm0, %v967_v1  ;;  %v90_v3 = vld [vmem:[#allocation2 + $0x8] sm:$0xff]  ;;  %v91_v4 = vld [vmem:[#allocation2 + $0x10] sm:$0xff]  ;;  %v92_v6 = vld [vmem:[#allocation2 + $0x18] sm:$0xff] }
  0x4b   :  { %751 = vmatprep.subr.bf16.mxu1 %v965_v0  ;;  %654 = vmatprep.mubr.msk.f32.mxu1 %vm966_vm0, %v967_v1  ;;  %v728_v5 = vpack.c.bf16 %v90_v3, %v89_v2  ;;  %v731_v7 = vpack.c.bf16 %v92_v6, %v91_v4  ;;  %v93_v8 = vld [vmem:[#allocation2 + $0x20] sm:$0xff]  ;;  %v94_v9 = vld [vmem:[#allocation2 + $0x28] sm:$0xff]  ;;  %v192_v12 = vld [vmem:[#allocation5 + $0x10] sm:$0xff] }
  0x4c   :  { %v190_v10 = vld [vmem:[#allocation5] sm:$0xff]  ;;  %v191_v11 = vld [vmem:[#allocation5 + $0x8] sm:$0xff]  ;;  %v193_v13 = vld [vmem:[#allocation5 + $0x18] sm:$0xff]  ;;  %v734_v14 = vpack.c.bf16 %v94_v9, %v93_v8 }
  0x4d   :  { %729 = vmatpush3.bf16.msra.mxu0 %v728_v5  ;;  %v752_v15 = vpack.c.bf16 %v191_v11, %v190_v10  ;;  %v95_v16 = vld [vmem:[#allocation2 + $0x30] sm:$0xff]  ;;  %v96_v17 = vld [vmem:[#allocation2 + $0x38] sm:$0xff]  ;;  %v755_v18 = vpack.c.bf16 %v193_v13, %v192_v12  ;;  %v97_v20 = vld [vmem:[#allocation2 + $0x40] sm:$0xff] }
  0x4e   :  { %730 = vmatprep.subr.bf16.mxu0 %v965_v0  ;;  %v737_v19 = vpack.c.bf16 %v96_v17, %v95_v16  ;;  %v98_v21 = vld [vmem:[#allocation2 + $0x48] sm:$0xff]  ;;  %v99_v23 = vld [vmem:[#allocation2 + $0x50] sm:$0xff]  ;;  %v100_v24 = vld [vmem:[#allocation2 + $0x58] sm:$0xff] }
  0x4f   :  { %753 = vmatpush3.bf16.msra.mxu1 %v752_v15  ;;  %v740_v22 = vpack.c.bf16 %v98_v21, %v97_v20  ;;  %v743_v25 = vpack.c.bf16 %v100_v24, %v99_v23  ;;  %v101_v26 = vld [vmem:[#allocation2 + $0x60] sm:$0xff]  ;;  %v102_v27 = vld [vmem:[#allocation2 + $0x68] sm:$0xff]  ;;  %v103_v29 = vld [vmem:[#allocation2 + $0x70] sm:$0xff] }
  0x50   :  { %754 = vmatprep.subr.bf16.mxu1 %v965_v0  ;;  %v746_v28 = vpack.c.bf16 %v102_v27, %v101_v26  ;;  %v104_v30 = vld [vmem:[#allocation2 + $0x78] sm:$0xff]  ;;  %v88_v32 = vld [vmem:[%s1160_s0] sm:$0xff]  ;;  %v195_v34 = vld [vmem:[#allocation5 + $0x28] sm:$0xff] }
  0x51   :  { %732 = vmatpush3.bf16.msra.mxu0 %v731_v7  ;;  %v749_v31 = vpack.c.bf16 %v104_v30, %v103_v29  ;;  %v194_v33 = vld [vmem:[#allocation5 + $0x20] sm:$0xff]  ;;  %v196_v36 = vld [vmem:[#allocation5 + $0x30] sm:$0xff]  ;;  %v197_v37 = vld [vmem:[#allocation5 + $0x38] sm:$0xff] }
  0x52   :  { %733 = vmatprep.subr.bf16.mxu0 %v965_v0  ;;  %v758_v35 = vpack.c.bf16 %v195_v34, %v194_v33  ;;  %v761_v38 = vpack.c.bf16 %v197_v37, %v196_v36  ;;  %v198_v39 = vld [vmem:[#allocation5 + $0x40] sm:$0xff]  ;;  %v199_v40 = vld [vmem:[#allocation5 + $0x48] sm:$0xff]  ;;  %v200_v42 = vld [vmem:[#allocation5 + $0x50] sm:$0xff] }
  0x53   :  { %756 = vmatpush3.bf16.msra.mxu1 %v755_v18  ;;  %v764_v41 = vpack.c.bf16 %v199_v40, %v198_v39  ;;  %v201_v43 = vld [vmem:[#allocation5 + $0x58] sm:$0xff]  ;;  %v202_v45 = vld [vmem:[#allocation5 + $0x60] sm:$0xff]  ;;  %v203_v46 = vld [vmem:[#allocation5 + $0x68] sm:$0xff] }
  0x54   :  { %757 = vmatprep.subr.bf16.mxu1 %v965_v0  ;;  %v767_v44 = vpack.c.bf16 %v201_v43, %v200_v42  ;;  %v770_v47 = vpack.c.bf16 %v203_v46, %v202_v45  ;;  %v204_v48 = vld [vmem:[#allocation5 + $0x70] sm:$0xff]  ;;  %v205_v49 = vld [vmem:[#allocation5 + $0x78] sm:$0xff]  ;;  %v291_v51 = vld [vmem:[#allocation7] sm:$0xff] }
  0x55   :  { %735 = vmatpush3.bf16.msra.mxu0 %v734_v14  ;;  %v773_v50 = vpack.c.bf16 %v205_v49, %v204_v48  ;;  %v292_v52 = vld [vmem:[#allocation7 + $0x8] sm:$0xff]  ;;  %v293_v53 = vld [vmem:[#allocation7 + $0x10] sm:$0xff]  ;;  %v294_v55 = vld [vmem:[#allocation7 + $0x18] sm:$0xff] }
  0x56   :  { %736 = vmatprep.subr.bf16.mxu0 %v965_v0  ;;  %v776_v54 = vpack.c.bf16 %v292_v52, %v291_v51  ;;  %v779_v56 = vpack.c.bf16 %v294_v55, %v293_v53  ;;  %v511_v57 = vld [vmem:[%s1165_s5] ss:$0 sm:$0xff]  ;;  %v296_v7 = vld [vmem:[#allocation7 + $0x28] sm:$0xff]  ;;  %v297_v9 = vld [vmem:[#allocation7 + $0x30] sm:$0xff] }
  0x57   :  { %759 = vmatpush3.bf16.msra.mxu1 %v758_v35  ;;  %v295_v6 = vld [vmem:[#allocation7 + $0x20] sm:$0xff]  ;;  %v298_v10 = vld [vmem:[#allocation7 + $0x38] sm:$0xff]  ;;  %v300_v13 = vld [vmem:[#allocation7 + $0x48] sm:$0xff] }
  0x58   :  { %760 = vmatprep.subr.bf16.mxu1 %v965_v0  ;;  %v782_v8 = vpack.c.bf16 %v296_v7, %v295_v6  ;;  %v785_v11 = vpack.c.bf16 %v298_v10, %v297_v9  ;;  %v299_v12 = vld [vmem:[#allocation7 + $0x40] sm:$0xff]  ;;  %v301_v15 = vld [vmem:[#allocation7 + $0x50] sm:$0xff]  ;;  %v304_v18 = vld [vmem:[#allocation7 + $0x68] sm:$0xff] }
  0x59   :  { %738 = vmatpush3.bf16.msra.mxu0 %v737_v19  ;;  %v788_v14 = vpack.c.bf16 %v300_v13, %v299_v12  ;;  %v303_v17 = vld [vmem:[#allocation7 + $0x60] sm:$0xff]  ;;  %v305_v20 = vld [vmem:[#allocation7 + $0x70] sm:$0xff]  ;;  %v306_v21 = vld [vmem:[#allocation7 + $0x78] sm:$0xff] }
  0x5a   :  { %739 = vmatprep.subr.bf16.mxu0 %v965_v0  ;;  %v794_v19 = vpack.c.bf16 %v304_v18, %v303_v17  ;;  %v392_v23 = vld [vmem:[#allocation8] sm:$0xff]  ;;  %v393_v24 = vld [vmem:[#allocation8 + $0x8] sm:$0xff]  ;;  %v395_v27 = vld [vmem:[#allocation8 + $0x18] sm:$0xff] }
  0x5b   :  { %762 = vmatpush3.bf16.msra.mxu1 %v761_v38  ;;  %v800_v26 = vpack.c.bf16 %v393_v24, %v392_v23  ;;  %v513_v29 = vld [vmem:[%s1166_s6] ss:$0 sm:$0xff]  ;;  %v398_v43 = vld [vmem:[#allocation8 + $0x30] sm:$0xff]  ;;  %v405_v53 = vld [vmem:[#allocation8 + $0x68] sm:$0xff] }
  0x5c   :  { %763 = vmatprep.subr.bf16.mxu1 %v965_v0  ;;  %v396_v40 = vld [vmem:[#allocation8 + $0x20] sm:$0xff]  ;;  %v402_v49 = vld [vmem:[#allocation8 + $0x50] sm:$0xff] }
  0x5d   :  { %741 = vmatpush3.bf16.msra.mxu0 %v740_v22  ;;  %v797_v22 = vpack.c.bf16 %v306_v21, %v305_v20  ;;  %v400_v46 = vld [vmem:[#allocation8 + $0x40] sm:$0xff]  ;;  %v406_v55 = vld [vmem:[#allocation8 + $0x70] sm:$0xff] }
  0x5e   :  { %742 = vmatprep.subr.bf16.mxu0 %v965_v0  ;;  %v404_v52 = vld [vmem:[#allocation8 + $0x60] sm:$0xff] }
  0x5f   :  { %765 = vmatpush3.bf16.msra.mxu1 %v764_v41  ;;  %v397_v41 = vld [vmem:[#allocation8 + $0x28] sm:$0xff]  ;;  %v517_v6 = vld [vmem:[%s1168_s8] ss:$0 sm:$0xff] }
  0x60   :  { %766 = vmatprep.subr.bf16.mxu1 %v965_v0  ;;  %v806_v42 = vpack.c.bf16 %v397_v41, %v396_v40 }
  0x61   :  { %744 = vmatpush3.bf16.msra.mxu0 %v743_v25  ;;  %v394_v25 = vld [vmem:[#allocation8 + $0x10] sm:$0xff] }
  0x62   :  { %745 = vmatprep.subr.bf16.mxu0 %v965_v0 }
  0x63   :  { %768 = vmatpush3.bf16.msra.mxu1 %v767_v44  ;;  %v399_v44 = vld [vmem:[#allocation8 + $0x38] sm:$0xff] }
  0x64   :  { %769 = vmatprep.subr.bf16.mxu1 %v965_v0  ;;  %v809_v45 = vpack.c.bf16 %v399_v44, %v398_v43 }
  0x65   :  { %747 = vmatpush3.bf16.msra.mxu0 %v746_v28  ;;  %v803_v28 = vpack.c.bf16 %v395_v27, %v394_v25 }
  0x66   :  { %748 = vmatprep.subr.bf16.mxu0 %v965_v0 }
  0x67   :  { %771 = vmatpush3.bf16.msra.mxu1 %v770_v47  ;;  %v401_v47 = vld [vmem:[#allocation8 + $0x48] sm:$0xff] }
  0x68   :  { %772 = vmatprep.subr.bf16.mxu1 %v965_v0  ;;  %v812_v48 = vpack.c.bf16 %v401_v47, %v400_v46 }
  0x69   :  { %750 = vmatpush3.bf16.msra.mxu0 %v749_v31 }
  0x6a   :  { %775 = vmatprep.subr.bf16.mxu0 %v965_v0 }
  0x6b   :  { %774 = vmatpush3.bf16.msra.mxu1 %v773_v50  ;;  %v403_v50 = vld [vmem:[#allocation8 + $0x58] sm:$0xff] }
  0x6c   :  { %620 = vmatmul.mubr.f32.vlgmr.msra.gmra.mrb[0].mxu0 %v88_v32  ;;  %799 = vmatprep.subr.bf16.mxu1 %v965_v0  ;;  %v815_v51 = vpack.c.bf16 %v403_v50, %v402_v49 }
  0x6d   :  { %689 = vmatprep.mubr.msk.f32.mxu0 %vm966_vm0, %v967_v1  ;;  %777 = vmatpush3.bf16.msra.mxu0 %v776_v54  ;;  %v818_v54 = vpack.c.bf16 %v405_v53, %v404_v52 }
  0x6e   :  { %778 = vmatprep.subr.bf16.mxu0 %v965_v0 }
  0x71   :  { %780 = vmatpush3.bf16.msra.mxu0 %v779_v56  ;;  %v407_v56 = vld [vmem:[#allocation8 + $0x78] sm:$0xff] }
  0x72   :  { %781 = vmatprep.subr.bf16.mxu0 %v965_v0 }
  0x75   :  { %783 = vmatpush3.bf16.msra.mxu0 %v782_v8 }
  0x76   :  { %784 = vmatprep.subr.bf16.mxu0 %v965_v0 }
  0x79   :  { %786 = vmatpush3.bf16.msra.mxu0 %v785_v11 }
  0x7a   :  { %787 = vmatprep.subr.bf16.mxu0 %v965_v0 }
  0x7d   :  { %789 = vmatpush3.bf16.msra.mxu0 %v788_v14 }
  0x7e   :  { %790 = vmatprep.subr.bf16.mxu0 %v965_v0 }
 0x13f   :  { %v178_v58 = vpop.f32.mrb[0].mxu0 }
 0x140   :  { %v179_v59 = vadd.f32 %v511_v57, %v178_v58  ;;  %v621_v60 = vpop.f32.mrb[1].mxu0  ;;  %v821_v57 = vpack.c.bf16 %v407_v56, %v406_v55  ;;  %v515_v58 = vld [vmem:[%s1167_s7] ss:$0 sm:$0xff]  ;;  %s968_s7 = smov [#allocation10]  }
 0x141   :  { %s500_s20 = sshll.u32 %s968_s7, 4  ;;  %s501_s20 = int_to_ptr.vmem [resolvable:$true] %s500_s20 }
 0x142   :  { %v182_v61 = vmin.f32 %v179_v59, 0.0  ;;  %vm187_vm1 = vcmp.gt.f32.partialorder %v179_v59, 0.0  ;;  %s929_s23 = scalar_lea.vmem %s501_s20, 128  ;;  %p934_p5 = scmp.lt.s32.totalorder %s501_s20, %s501_s20 }
 0x143   :  { %p930_p4 = scmp.ne.s32.totalorder %s501_s20, %s929_s23  ;;  %p935_p6 = scmp.lt.s32.totalorder %s929_s23, %s929_s23 }
 0x144   :  { %v183_v62 = vmul.f32 1.442695, %v182_v61 }
 0x145   :  { %p936_p7 = por %p935_p6, %p934_p5 }
 0x146   :  { %833 = vpow2.f32 %v183_v62 }
 0x147   :  { %p937_p8 = pnand %p936_p7, %p930_p4 }
 0x150   :  { %v834_v63 = vpop.eup %833 }
 0x151   :  { %v512_v2 = vadd.f32 -1.0, %v834_v63 }
 0x153   :  { %v186_v3 = vmul.f32 1.6732632, %v512_v2 }
 0x155   :  { %v188_v4 = vsel %vm187_vm1, %v179_v59, %v186_v3 }
 0x156   :  { %v189_v5 = vmul.f32 1.050701, %v188_v4 }
 0x158   :  { %655 = vmatmul.mubr.f32.vlgmr.msra.gmra.mrb[0].mxu1 %v189_v5 }
 0x159   :  { %724 = vmatprep.mubr.msk.f32.mxu1 %vm966_vm0, %v967_v1  ;;  %v302_v1 = vld [vmem:[#allocation7 + $0x58] sm:$0xff]  ;;  %801 = vmatpush3.bf16.msra.mxu1 %v800_v26 }
 0x15a   :  { %v791_v16 = vpack.c.bf16 %v302_v1, %v301_v15  ;;  %802 = vmatprep.subr.bf16.mxu1 %v965_v0 }
 0x15c   :  { %792 = vmatpush3.bf16.msra.mxu0 %v791_v16 }
 0x15d   :  { %793 = vmatprep.subr.bf16.mxu0 %v965_v0  ;;  %804 = vmatpush3.bf16.msra.mxu1 %v803_v28 }
 0x15e   :  { %805 = vmatprep.subr.bf16.mxu1 %v965_v0 }
 0x160   :  { %795 = vmatpush3.bf16.msra.mxu0 %v794_v19 }
 0x161   :  { %796 = vmatprep.subr.bf16.mxu0 %v965_v0  ;;  %807 = vmatpush3.bf16.msra.mxu1 %v806_v42 }
 0x162   :  { %808 = vmatprep.subr.bf16.mxu1 %v965_v0 }
 0x164   :  { %798 = vmatpush3.bf16.msra.mxu0 %v797_v22 }
 0x165   :  { %810 = vmatpush3.bf16.msra.mxu1 %v809_v45 }
 0x166   :  { %811 = vmatprep.subr.bf16.mxu1 %v965_v0 }
 0x169   :  { %813 = vmatpush3.bf16.msra.mxu1 %v812_v48 }
 0x16a   :  { %814 = vmatprep.subr.bf16.mxu1 %v965_v0 }
 0x16d   :  { %816 = vmatpush3.bf16.msra.mxu1 %v815_v51 }
 0x16e   :  { %817 = vmatprep.subr.bf16.mxu1 %v965_v0 }
 0x171   :  { %819 = vmatpush3.bf16.msra.mxu1 %v818_v54 }
 0x172   :  { %820 = vmatprep.subr.bf16.mxu1 %v965_v0 }
 0x175   :  { %822 = vmatpush3.bf16.msra.mxu1 %v821_v57 }
 0x22b   :  { %v279_v30 = vpop.f32.mrb[0].mxu1 }
 0x22c   :  { %v280_v31 = vadd.f32 %v513_v29, %v279_v30  ;;  %v656_v32 = vpop.f32.mrb[1].mxu1 }
 0x22e   :  { %v283_v33 = vmin.f32 %v280_v31, 0.0  ;;  %vm288_vm2 = vcmp.gt.f32.partialorder %v280_v31, 0.0 }
 0x230   :  { %v284_v34 = vmul.f32 1.442695, %v283_v33 }
 0x232   :  { %835 = vpow2.f32 %v284_v34 }
 0x23c   :  { %v836_v35 = vpop.eup %835 }
 0x23d   :  { %v514_v36 = vadd.f32 -1.0, %v836_v35 }
 0x23f   :  { %v287_v37 = vmul.f32 1.6732632, %v514_v36 }
 0x241   :  { %v289_v38 = vsel %vm288_vm2, %v280_v31, %v287_v37 }
 0x242   :  { %v290_v39 = vmul.f32 1.050701, %v289_v38 }
 0x244   :  { %690 = vmatmul.mubr.f32.vlgmr.msra.gmra.mrb[2].mxu0 %v290_v39 }
 0x317   :  { %v380_v59 = vpop.f32.mrb[2].mxu0 }
 0x318   :  { %v381_v60 = vadd.f32 %v515_v58, %v380_v59  ;;  %v691_v61 = vpop.f32.mrb[3].mxu0 }
 0x31a   :  { %v384_v62 = vmin.f32 %v381_v60, 0.0  ;;  %vm389_vm3 = vcmp.gt.f32.partialorder %v381_v60, 0.0 }
 0x31c   :  { %v385_v63 = vmul.f32 1.442695, %v384_v62 }
 0x31e   :  { %837 = vpow2.f32 %v385_v63 }
 0x328   :  { %v838_v2 = vpop.eup %837 }
 0x329   :  { %v516_v3 = vadd.f32 -1.0, %v838_v2 }
 0x32b   :  { %v388_v4 = vmul.f32 1.6732632, %v516_v3 }
 0x32d   :  { %v390_v5 = vsel %vm389_vm3, %v381_v60, %v388_v4 }
 0x32e   :  { %v391_v0 = vmul.f32 1.050701, %v390_v5 }
 0x330   :  { %725 = vmatmul.mubr.f32.vlgmr.msra.gmra.mrb[2].mxu1 %v391_v0 }
 0x403   :  { %v481_v7 = vpop.f32.mrb[2].mxu1 }
 0x404   :  { %v482_v8 = vadd.f32 %v517_v6, %v481_v7  ;;  %v726_v9 = vpop.f32.mrb[3].mxu1 }
 0x406   :  { %v485_v10 = vmin.f32 %v482_v8, 0.0  ;;  %vm490_vm4 = vcmp.gt.f32.partialorder %v482_v8, 0.0 }
 0x408   :  { %v486_v11 = vmul.f32 1.442695, %v485_v10 }
 0x40a   :  { %839 = vpow2.f32 %v486_v11 }
 0x414   :  { %v840_v12 = vpop.eup %839 }
 0x415   :  { %v518_v13 = vadd.f32 -1.0, %v840_v12 }
 0x417   :  { %v489_v14 = vmul.f32 1.6732632, %v518_v13 }
 0x419   :  { %v491_v15 = vsel %vm490_vm4, %v482_v8, %v489_v14 }
 0x41a   :  { %v492_v1 = vmul.f32 1.050701, %v491_v15 }
 0x41c   :  { %493 = vst [vmem:[#allocation10] sm:$0xff] %v492_v1 }
 0x41d   :  { %940 = shalt.err (!%p937_p8)
}
 0x41e   :  { %s941_s25 = scalar_lea.hbm %s1169_s9, 128 }
 0x41f   :  { %p942_p9 = scmp.ne.s32.totalorder %s1169_s9, %s941_s25  ;;  %p945_p10 = scmp.lt.u32.totalorder %s941_s25, %s1169_s9 }
 0x421   :  { %p947_p11 = pnand %p945_p10, %p942_p9 }
 0x423   :  { %950 = shalt.err (!%p947_p11)
}
 0x424   :  { %503 = dma.vmem_to_hbm [thread:$0]  %s501_s20, 128, %s1169_s9, [#allocation4]  }
 0x425   :  { %957 = dma.done.wait [#allocation4], 128  }
 0x426   :  { %958 = vsyncadd [#allocation4], 4294967168 }
 0x427   :  { %507 = vsyncpa [#allocation3], 1 }
 0x428   :  { %508 = vsyncpa [#allocation6], 1 }
 0x429   :  { %509 = vsyncpa [#allocation9], 1 }
 0x42a   :  { %510 = vsyncpa [#allocation4], 1 }

// kernel: autoencoder_forward.1
= control target key start
LH: loop header
LB: loop body
LE: loop exit
PB: predicated region body
PF: predicated region fallthrough
CT: control target
= control target key end

     0   :  { %14 = vsyncpa [#allocation3], 0  ;;  %s1160_s0 = inlined_call_operand.vmem [shape: f32[8,128], index: 0, kind: input, shape index: {}]   ;;  %s1161_s1 = inlined_call_operand.hbm [shape: f32[128,128], index: 1, kind: input, shape index: {}]   ;;  %s1162_s2 = inlined_call_operand.hbm [shape: f32[128,128], index: 2, kind: input, shape index: {}]   ;;  %s1163_s3 = inlined_call_operand.hbm [shape: f32[128,128], index: 3, kind: input, shape index: {}]   ;;  %s1164_s4 = inlined_call_operand.hbm [shape: f32[128,128], index: 4, kind: input, shape index: {}]   ;;  %s1165_s5 = inlined_call_operand.vmem [shape: f32[1,128], index: 5, kind: input, shape index: {}]   ;;  %s1166_s6 = inlined_call_operand.vmem [shape: f32[1,128], index: 6, kind: input, shape index: {}]   ;;  %s1167_s7 = inlined_call_operand.vmem [shape: f32[1,128], index: 7, kind: input, shape index: {}]   ;;  %s1168_s8 = inlined_call_operand.vmem [shape: f32[1,128], index: 8, kind: input, shape index: {}]   ;;  %s1169_s9 = inlined_call_operand.hbm [shape: f32[8,128], index: 9, kind: output, shape index: {}]  }
   0x1   :  { %15 = vsyncpa [#allocation6], 0 }
   0x2   :  { %16 = vsyncpa [#allocation9], 0 }
   0x3   :  { %17 = vsyncpa [#allocation4], 0  ;;  %s959_s30 = smov [#allocation5]   ;;  %s960_s11 = smov [#allocation2]  }
   0x4   :  { %s37_s10 = sshll.u32 %s959_s30, 4  ;;  %s25_s12 = sshll.u32 %s960_s11, 4  ;;  %s38_s10 = int_to_ptr.vmem [resolvable:$true] %s37_s10  ;;  %s1019_s12 = int_to_ptr.vmem [resolvable:$true] %s25_s12 }
   0x5   :  { %s841_s15 = scalar_lea.hbm %s1162_s2, 2048 }
   0x6   :  { %p842_p0 = scmp.ne.s32.totalorder %s1162_s2, %s841_s15  ;;  %p845_p1 = scmp.lt.u32.totalorder %s841_s15, %s1162_s2 }
   0x8   :  { %p847_p2 = pnand %p845_p1, %p842_p0 }
   0xa   :  { %850 = shalt.err (!%p847_p2)
}
   0xb   :  { %s851_s20 = scalar_lea.vmem %s38_s10, 2048  ;;  %p856_p4 = scmp.lt.s32.totalorder %s38_s10, %s38_s10 }
   0xc   :  { %p852_p3 = scmp.ne.s32.totalorder %s38_s10, %s851_s20  ;;  %p857_p5 = scmp.lt.s32.totalorder %s851_s20, %s851_s20 }
   0xe   :  { %p858_p6 = por %p857_p5, %p856_p4 }
  0x10   :  { %p859_p7 = pnand %p858_p6, %p852_p3 }
  0x12   :  { %862 = shalt.err (!%p859_p7)
}
  0x13   :  { %s961_s21 = smov 128   ;;  %s962_s22 = smov 8  }
  0x14   :  { %43 = dma.hbm_to_vmem [thread:$0]  %s1162_s2, 2048, %s38_s10, [#allocation6], %s961_s21, %s961_s21, %s962_s22  }
  0x15   :  { %s863_s27 = scalar_lea.hbm %s1161_s1, 2048 }
  0x16   :  { %p864_p8 = scmp.ne.s32.totalorder %s1161_s1, %s863_s27  ;;  %p867_p9 = scmp.lt.u32.totalorder %s863_s27, %s1161_s1 }
  0x18   :  { %p869_p10 = pnand %p867_p9, %p864_p8 }
  0x1a   :  { %872 = shalt.err (!%p869_p10)
}
  0x1b   :  { %s873_s13 = scalar_lea.vmem %s1019_s12, 2048  ;;  %p878_p12 = scmp.lt.s32.totalorder %s1019_s12, %s1019_s12 }
  0x1c   :  { %p874_p11 = scmp.ne.s32.totalorder %s1019_s12, %s873_s13  ;;  %p879_p13 = scmp.lt.s32.totalorder %s873_s13, %s873_s13 }
  0x1e   :  { %p880_p0 = por %p879_p13, %p878_p12 }
  0x20   :  { %p881_p1 = pnand %p880_p0, %p874_p11 }
  0x22   :  { %884 = shalt.err (!%p881_p1)
}
  0x23   :  { %31 = dma.hbm_to_vmem [thread:$0]  %s1161_s1, 2048, %s1019_s12, [#allocation3], %s961_s21, %s961_s21, %s962_s22  }
  0x24   :  { %s963_s14 = smov [#allocation7]   ;;  %s964_s16 = smov [#allocation8]  }
  0x25   :  { %s49_s15 = sshll.u32 %s963_s14, 4  ;;  %s61_s17 = sshll.u32 %s964_s16, 4  ;;  %s50_s15 = int_to_ptr.vmem [resolvable:$true] %s49_s15  ;;  %s1056_s17 = int_to_ptr.vmem [resolvable:$true] %s61_s17 }
  0x26   :  { %s885_s20 = scalar_lea.hbm %s1163_s3, 2048 }
  0x27   :  { %p886_p2 = scmp.ne.s32.totalorder %s1163_s3, %s885_s20  ;;  %p889_p3 = scmp.lt.u32.totalorder %s885_s20, %s1163_s3 }
  0x29   :  { %p891_p4 = pnand %p889_p3, %p886_p2 }
  0x2b   :  { %894 = shalt.err (!%p891_p4)
}
  0x2c   :  { %s895_s1 = scalar_lea.vmem %s50_s15, 2048  ;;  %p900_p6 = scmp.lt.s32.totalorder %s50_s15, %s50_s15 }
  0x2d   :  { %p896_p5 = scmp.ne.s32.totalorder %s50_s15, %s895_s1  ;;  %p901_p7 = scmp.lt.s32.totalorder %s895_s1, %s895_s1 }
  0x2f   :  { %p902_p8 = por %p901_p7, %p900_p6 }
  0x31   :  { %p903_p9 = pnand %p902_p8, %p896_p5 }
  0x33   :  { %906 = shalt.err (!%p903_p9)
}
  0x34   :  { %55 = dma.hbm_to_vmem [thread:$0]  %s1163_s3, 2048, %s50_s15, [#allocation6], %s961_s21, %s961_s21, %s962_s22  }
  0x35   :  { %s907_s30 = scalar_lea.hbm %s1164_s4, 2048 }
  0x36   :  { %p908_p10 = scmp.ne.s32.totalorder %s1164_s4, %s907_s30  ;;  %p911_p11 = scmp.lt.u32.totalorder %s907_s30, %s1164_s4 }
  0x38   :  { %p913_p12 = pnand %p911_p11, %p908_p10 }
  0x3a   :  { %916 = shalt.err (!%p913_p12)
}
  0x3b   :  { %s917_s14 = scalar_lea.vmem %s1056_s17, 2048  ;;  %p922_p0 = scmp.lt.s32.totalorder %s1056_s17, %s1056_s17 }
  0x3c   :  { %p918_p13 = scmp.ne.s32.totalorder %s1056_s17, %s917_s14  ;;  %p923_p1 = scmp.lt.s32.totalorder %s917_s14, %s917_s14 }
  0x3e   :  { %p924_p2 = por %p923_p1, %p922_p0 }
  0x40   :  { %p925_p3 = pnand %p924_p2, %p918_p13 }
  0x42   :  { %928 = shalt.err (!%p925_p3)
}
  0x43   :  { %67 = dma.hbm_to_vmem [thread:$0]  %s1164_s4, 2048, %s1056_s17, [#allocation9], %s961_s21, %s961_s21, %s962_s22  }
  0x44   :  { %951 = dma.done.wait [#allocation3], 2048  }
  0x45   :  { %952 = vsyncadd [#allocation3], 4294965248 }
  0x46   :  { %953 = dma.done.wait [#allocation6], 4096  }
  0x47   :  { %954 = vsyncadd [#allocation6], 4294963200 }
  0x48   :  { %955 = dma.done.wait [#allocation9], 2048  }
  0x49   :  { %956 = vsyncadd [#allocation9], 4294965248  ;;  %v965_v0 = vmov 0.0|0.0   ;;  %vm966_vm0 = vmmov 0   ;;  %v967_v1 = vmov 0.0   ;;  %v89_v2 = vld [vmem:[#allocation2] sm:$0xff] }
  0x4a   :  { %727 = vmatprep.subr.bf16.mxu0 %v965_v0  ;;  %619 = vmatprep.mubr.msk.f32.mxu0 %vm966_vm0, %v967_v1  ;;  %v90_v3 = vld [vmem:[#allocation2 + $0x8] sm:$0xff]  ;;  %v91_v4 = vld [vmem:[#allocation2 + $0x10] sm:$0xff]  ;;  %v92_v6 = vld [vmem:[#allocation2 + $0x18] sm:$0xff] }
  0x4b   :  { %751 = vmatprep.subr.bf16.mxu1 %v965_v0  ;;  %654 = vmatprep.mubr.msk.f32.mxu1 %vm966_vm0, %v967_v1  ;;  %v728_v5 = vpack.c.bf16 %v90_v3, %v89_v2  ;;  %v731_v7 = vpack.c.bf16 %v92_v6, %v91_v4  ;;  %v93_v8 = vld [vmem:[#allocation2 + $0x20] sm:$0xff]  ;;  %v94_v9 = vld [vmem:[#allocation2 + $0x28] sm:$0xff]  ;;  %v192_v12 = vld [vmem:[#allocation5 + $0x10] sm:$0xff] }
  0x4c   :  { %v190_v10 = vld [vmem:[#allocation5] sm:$0xff]  ;;  %v191_v11 = vld [vmem:[#allocation5 + $0x8] sm:$0xff]  ;;  %v193_v13 = vld [vmem:[#allocation5 + $0x18] sm:$0xff]  ;;  %v734_v14 = vpack.c.bf16 %v94_v9, %v93_v8 }
  0x4d   :  { %729 = vmatpush3.bf16.msra.mxu0 %v728_v5  ;;  %v752_v15 = vpack.c.bf16 %v191_v11, %v190_v10  ;;  %v95_v16 = vld [vmem:[#allocation2 + $0x30] sm:$0xff]  ;;  %v96_v17 = vld [vmem:[#allocation2 + $0x38] sm:$0xff]  ;;  %v755_v18 = vpack.c.bf16 %v193_v13, %v192_v12  ;;  %v97_v20 = vld [vmem:[#allocation2 + $0x40] sm:$0xff] }
  0x4e   :  { %730 = vmatprep.subr.bf16.mxu0 %v965_v0  ;;  %v737_v19 = vpack.c.bf16 %v96_v17, %v95_v16  ;;  %v98_v21 = vld [vmem:[#allocation2 + $0x48] sm:$0xff]  ;;  %v99_v23 = vld [vmem:[#allocation2 + $0x50] sm:$0xff]  ;;  %v100_v24 = vld [vmem:[#allocation2 + $0x58] sm:$0xff] }
  0x4f   :  { %753 = vmatpush3.bf16.msra.mxu1 %v752_v15  ;;  %v740_v22 = vpack.c.bf16 %v98_v21, %v97_v20  ;;  %v743_v25 = vpack.c.bf16 %v100_v24, %v99_v23  ;;  %v101_v26 = vld [vmem:[#allocation2 + $0x60] sm:$0xff]  ;;  %v102_v27 = vld [vmem:[#allocation2 + $0x68] sm:$0xff]  ;;  %v103_v29 = vld [vmem:[#allocation2 + $0x70] sm:$0xff] }
  0x50   :  { %754 = vmatprep.subr.bf16.mxu1 %v965_v0  ;;  %v746_v28 = vpack.c.bf16 %v102_v27, %v101_v26  ;;  %v104_v30 = vld [vmem:[#allocation2 + $0x78] sm:$0xff]  ;;  %v88_v32 = vld [vmem:[%s1160_s0] sm:$0xff]  ;;  %v195_v34 = vld [vmem:[#allocation5 + $0x28] sm:$0xff] }
  0x51   :  { %732 = vmatpush3.bf16.msra.mxu0 %v731_v7  ;;  %v749_v31 = vpack.c.bf16 %v104_v30, %v103_v29  ;;  %v194_v33 = vld [vmem:[#allocation5 + $0x20] sm:$0xff]  ;;  %v196_v36 = vld [vmem:[#allocation5 + $0x30] sm:$0xff]  ;;  %v197_v37 = vld [vmem:[#allocation5 + $0x38] sm:$0xff] }
  0x52   :  { %733 = vmatprep.subr.bf16.mxu0 %v965_v0  ;;  %v758_v35 = vpack.c.bf16 %v195_v34, %v194_v33  ;;  %v761_v38 = vpack.c.bf16 %v197_v37, %v196_v36  ;;  %v198_v39 = vld [vmem:[#allocation5 + $0x40] sm:$0xff]  ;;  %v199_v40 = vld [vmem:[#allocation5 + $0x48] sm:$0xff]  ;;  %v200_v42 = vld [vmem:[#allocation5 + $0x50] sm:$0xff] }
  0x53   :  { %756 = vmatpush3.bf16.msra.mxu1 %v755_v18  ;;  %v764_v41 = vpack.c.bf16 %v199_v40, %v198_v39  ;;  %v201_v43 = vld [vmem:[#allocation5 + $0x58] sm:$0xff]  ;;  %v202_v45 = vld [vmem:[#allocation5 + $0x60] sm:$0xff]  ;;  %v203_v46 = vld [vmem:[#allocation5 + $0x68] sm:$0xff] }
  0x54   :  { %757 = vmatprep.subr.bf16.mxu1 %v965_v0  ;;  %v767_v44 = vpack.c.bf16 %v201_v43, %v200_v42  ;;  %v770_v47 = vpack.c.bf16 %v203_v46, %v202_v45  ;;  %v204_v48 = vld [vmem:[#allocation5 + $0x70] sm:$0xff]  ;;  %v205_v49 = vld [vmem:[#allocation5 + $0x78] sm:$0xff]  ;;  %v291_v51 = vld [vmem:[#allocation7] sm:$0xff] }
  0x55   :  { %735 = vmatpush3.bf16.msra.mxu0 %v734_v14  ;;  %v773_v50 = vpack.c.bf16 %v205_v49, %v204_v48  ;;  %v292_v52 = vld [vmem:[#allocation7 + $0x8] sm:$0xff]  ;;  %v293_v53 = vld [vmem:[#allocation7 + $0x10] sm:$0xff]  ;;  %v294_v55 = vld [vmem:[#allocation7 + $0x18] sm:$0xff] }
  0x56   :  { %736 = vmatprep.subr.bf16.mxu0 %v965_v0  ;;  %v776_v54 = vpack.c.bf16 %v292_v52, %v291_v51  ;;  %v779_v56 = vpack.c.bf16 %v294_v55, %v293_v53  ;;  %v511_v57 = vld [vmem:[%s1165_s5] ss:$0 sm:$0xff]  ;;  %v296_v7 = vld [vmem:[#allocation7 + $0x28] sm:$0xff]  ;;  %v297_v9 = vld [vmem:[#allocation7 + $0x30] sm:$0xff] }
  0x57   :  { %759 = vmatpush3.bf16.msra.mxu1 %v758_v35  ;;  %v295_v6 = vld [vmem:[#allocation7 + $0x20] sm:$0xff]  ;;  %v298_v10 = vld [vmem:[#allocation7 + $0x38] sm:$0xff]  ;;  %v300_v13 = vld [vmem:[#allocation7 + $0x48] sm:$0xff] }
  0x58   :  { %760 = vmatprep.subr.bf16.mxu1 %v965_v0  ;;  %v782_v8 = vpack.c.bf16 %v296_v7, %v295_v6  ;;  %v785_v11 = vpack.c.bf16 %v298_v10, %v297_v9  ;;  %v299_v12 = vld [vmem:[#allocation7 + $0x40] sm:$0xff]  ;;  %v301_v15 = vld [vmem:[#allocation7 + $0x50] sm:$0xff]  ;;  %v304_v18 = vld [vmem:[#allocation7 + $0x68] sm:$0xff] }
  0x59   :  { %738 = vmatpush3.bf16.msra.mxu0 %v737_v19  ;;  %v788_v14 = vpack.c.bf16 %v300_v13, %v299_v12  ;;  %v303_v17 = vld [vmem:[#allocation7 + $0x60] sm:$0xff]  ;;  %v305_v20 = vld [vmem:[#allocation7 + $0x70] sm:$0xff]  ;;  %v306_v21 = vld [vmem:[#allocation7 + $0x78] sm:$0xff] }
  0x5a   :  { %739 = vmatprep.subr.bf16.mxu0 %v965_v0  ;;  %v794_v19 = vpack.c.bf16 %v304_v18, %v303_v17  ;;  %v392_v23 = vld [vmem:[#allocation8] sm:$0xff]  ;;  %v393_v24 = vld [vmem:[#allocation8 + $0x8] sm:$0xff]  ;;  %v395_v27 = vld [vmem:[#allocation8 + $0x18] sm:$0xff] }
  0x5b   :  { %762 = vmatpush3.bf16.msra.mxu1 %v761_v38  ;;  %v800_v26 = vpack.c.bf16 %v393_v24, %v392_v23  ;;  %v513_v29 = vld [vmem:[%s1166_s6] ss:$0 sm:$0xff]  ;;  %v398_v43 = vld [vmem:[#allocation8 + $0x30] sm:$0xff]  ;;  %v405_v53 = vld [vmem:[#allocation8 + $0x68] sm:$0xff] }
  0x5c   :  { %763 = vmatprep.subr.bf16.mxu1 %v965_v0  ;;  %v396_v40 = vld [vmem:[#allocation8 + $0x20] sm:$0xff]  ;;  %v402_v49 = vld [vmem:[#allocation8 + $0x50] sm:$0xff] }
  0x5d   :  { %741 = vmatpush3.bf16.msra.mxu0 %v740_v22  ;;  %v797_v22 = vpack.c.bf16 %v306_v21, %v305_v20  ;;  %v400_v46 = vld [vmem:[#allocation8 + $0x40] sm:$0xff]  ;;  %v406_v55 = vld [vmem:[#allocation8 + $0x70] sm:$0xff] }
  0x5e   :  { %742 = vmatprep.subr.bf16.mxu0 %v965_v0  ;;  %v404_v52 = vld [vmem:[#allocation8 + $0x60] sm:$0xff] }
  0x5f   :  { %765 = vmatpush3.bf16.msra.mxu1 %v764_v41  ;;  %v397_v41 = vld [vmem:[#allocation8 + $0x28] sm:$0xff]  ;;  %v517_v6 = vld [vmem:[%s1168_s8] ss:$0 sm:$0xff] }
  0x60   :  { %766 = vmatprep.subr.bf16.mxu1 %v965_v0  ;;  %v806_v42 = vpack.c.bf16 %v397_v41, %v396_v40 }
  0x61   :  { %744 = vmatpush3.bf16.msra.mxu0 %v743_v25  ;;  %v394_v25 = vld [vmem:[#allocation8 + $0x10] sm:$0xff] }
  0x62   :  { %745 = vmatprep.subr.bf16.mxu0 %v965_v0 }
  0x63   :  { %768 = vmatpush3.bf16.msra.mxu1 %v767_v44  ;;  %v399_v44 = vld [vmem:[#allocation8 + $0x38] sm:$0xff] }
  0x64   :  { %769 = vmatprep.subr.bf16.mxu1 %v965_v0  ;;  %v809_v45 = vpack.c.bf16 %v399_v44, %v398_v43 }
  0x65   :  { %747 = vmatpush3.bf16.msra.mxu0 %v746_v28  ;;  %v803_v28 = vpack.c.bf16 %v395_v27, %v394_v25 }
  0x66   :  { %748 = vmatprep.subr.bf16.mxu0 %v965_v0 }
  0x67   :  { %771 = vmatpush3.bf16.msra.mxu1 %v770_v47  ;;  %v401_v47 = vld [vmem:[#allocation8 + $0x48] sm:$0xff] }
  0x68   :  { %772 = vmatprep.subr.bf16.mxu1 %v965_v0  ;;  %v812_v48 = vpack.c.bf16 %v401_v47, %v400_v46 }
  0x69   :  { %750 = vmatpush3.bf16.msra.mxu0 %v749_v31 }
  0x6a   :  { %775 = vmatprep.subr.bf16.mxu0 %v965_v0 }
  0x6b   :  { %774 = vmatpush3.bf16.msra.mxu1 %v773_v50  ;;  %v403_v50 = vld [vmem:[#allocation8 + $0x58] sm:$0xff] }
  0x6c   :  { %620 = vmatmul.mubr.f32.vlgmr.msra.gmra.mrb[0].mxu0 %v88_v32  ;;  %799 = vmatprep.subr.bf16.mxu1 %v965_v0  ;;  %v815_v51 = vpack.c.bf16 %v403_v50, %v402_v49 }
  0x6d   :  { %689 = vmatprep.mubr.msk.f32.mxu0 %vm966_vm0, %v967_v1  ;;  %777 = vmatpush3.bf16.msra.mxu0 %v776_v54  ;;  %v818_v54 = vpack.c.bf16 %v405_v53, %v404_v52 }
  0x6e   :  { %778 = vmatprep.subr.bf16.mxu0 %v965_v0 }
  0x71   :  { %780 = vmatpush3.bf16.msra.mxu0 %v779_v56  ;;  %v407_v56 = vld [vmem:[#allocation8 + $0x78] sm:$0xff] }
  0x72   :  { %781 = vmatprep.subr.bf16.mxu0 %v965_v0 }
  0x75   :  { %783 = vmatpush3.bf16.msra.mxu0 %v782_v8 }
  0x76   :  { %784 = vmatprep.subr.bf16.mxu0 %v965_v0 }
  0x79   :  { %786 = vmatpush3.bf16.msra.mxu0 %v785_v11 }
  0x7a   :  { %787 = vmatprep.subr.bf16.mxu0 %v965_v0 }
  0x7d   :  { %789 = vmatpush3.bf16.msra.mxu0 %v788_v14 }
  0x7e   :  { %790 = vmatprep.subr.bf16.mxu0 %v965_v0 }
 0x13f   :  { %v178_v58 = vpop.f32.mrb[0].mxu0 }
 0x140   :  { %v179_v59 = vadd.f32 %v511_v57, %v178_v58  ;;  %v621_v60 = vpop.f32.mrb[1].mxu0  ;;  %v821_v57 = vpack.c.bf16 %v407_v56, %v406_v55  ;;  %v515_v58 = vld [vmem:[%s1167_s7] ss:$0 sm:$0xff]  ;;  %s968_s7 = smov [#allocation10]  }
 0x141   :  { %s500_s20 = sshll.u32 %s968_s7, 4  ;;  %s501_s20 = int_to_ptr.vmem [resolvable:$true] %s500_s20 }
 0x142   :  { %v182_v61 = vmin.f32 %v179_v59, 0.0  ;;  %vm187_vm1 = vcmp.gt.f32.partialorder %v179_v59, 0.0  ;;  %s929_s23 = scalar_lea.vmem %s501_s20, 128  ;;  %p934_p5 = scmp.lt.s32.totalorder %s501_s20, %s501_s20 }
 0x143   :  { %p930_p4 = scmp.ne.s32.totalorder %s501_s20, %s929_s23  ;;  %p935_p6 = scmp.lt.s32.totalorder %s929_s23, %s929_s23 }
 0x144   :  { %v183_v62 = vmul.f32 1.442695, %v182_v61 }
 0x145   :  { %p936_p7 = por %p935_p6, %p934_p5 }
 0x146   :  { %833 = vpow2.f32 %v183_v62 }
 0x147   :  { %p937_p8 = pnand %p936_p7, %p930_p4 }
 0x150   :  { %v834_v63 = vpop.eup %833 }
 0x151   :  { %v512_v2 = vadd.f32 -1.0, %v834_v63 }
 0x153   :  { %v186_v3 = vmul.f32 1.6732632, %v512_v2 }
 0x155   :  { %v188_v4 = vsel %vm187_vm1, %v179_v59, %v186_v3 }
 0x156   :  { %v189_v5 = vmul.f32 1.050701, %v188_v4 }
 0x158   :  { %655 = vmatmul.mubr.f32.vlgmr.msra.gmra.mrb[0].mxu1 %v189_v5 }
 0x159   :  { %724 = vmatprep.mubr.msk.f32.mxu1 %vm966_vm0, %v967_v1  ;;  %v302_v1 = vld [vmem:[#allocation7 + $0x58] sm:$0xff]  ;;  %801 = vmatpush3.bf16.msra.mxu1 %v800_v26 }
 0x15a   :  { %v791_v16 = vpack.c.bf16 %v302_v1, %v301_v15  ;;  %802 = vmatprep.subr.bf16.mxu1 %v965_v0 }
 0x15c   :  { %792 = vmatpush3.bf16.msra.mxu0 %v791_v16 }
 0x15d   :  { %793 = vmatprep.subr.bf16.mxu0 %v965_v0  ;;  %804 = vmatpush3.bf16.msra.mxu1 %v803_v28 }
 0x15e   :  { %805 = vmatprep.subr.bf16.mxu1 %v965_v0 }
 0x160   :  { %795 = vmatpush3.bf16.msra.mxu0 %v794_v19 }
 0x161   :  { %796 = vmatprep.subr.bf16.mxu0 %v965_v0  ;;  %807 = vmatpush3.bf16.msra.mxu1 %v806_v42 }
 0x162   :  { %808 = vmatprep.subr.bf16.mxu1 %v965_v0 }
 0x164   :  { %798 = vmatpush3.bf16.msra.mxu0 %v797_v22 }
 0x165   :  { %810 = vmatpush3.bf16.msra.mxu1 %v809_v45 }
 0x166   :  { %811 = vmatprep.subr.bf16.mxu1 %v965_v0 }
 0x169   :  { %813 = vmatpush3.bf16.msra.mxu1 %v812_v48 }
 0x16a   :  { %814 = vmatprep.subr.bf16.mxu1 %v965_v0 }
 0x16d   :  { %816 = vmatpush3.bf16.msra.mxu1 %v815_v51 }
 0x16e   :  { %817 = vmatprep.subr.bf16.mxu1 %v965_v0 }
 0x171   :  { %819 = vmatpush3.bf16.msra.mxu1 %v818_v54 }
 0x172   :  { %820 = vmatprep.subr.bf16.mxu1 %v965_v0 }
 0x175   :  { %822 = vmatpush3.bf16.msra.mxu1 %v821_v57 }
 0x22b   :  { %v279_v30 = vpop.f32.mrb[0].mxu1 }
 0x22c   :  { %v280_v31 = vadd.f32 %v513_v29, %v279_v30  ;;  %v656_v32 = vpop.f32.mrb[1].mxu1 }
 0x22e   :  { %v283_v33 = vmin.f32 %v280_v31, 0.0  ;;  %vm288_vm2 = vcmp.gt.f32.partialorder %v280_v31, 0.0 }
 0x230   :  { %v284_v34 = vmul.f32 1.442695, %v283_v33 }
 0x232   :  { %835 = vpow2.f32 %v284_v34 }
 0x23c   :  { %v836_v35 = vpop.eup %835 }
 0x23d   :  { %v514_v36 = vadd.f32 -1.0, %v836_v35 }
 0x23f   :  { %v287_v37 = vmul.f32 1.6732632, %v514_v36 }
 0x241   :  { %v289_v38 = vsel %vm288_vm2, %v280_v31, %v287_v37 }
 0x242   :  { %v290_v39 = vmul.f32 1.050701, %v289_v38 }
 0x244   :  { %690 = vmatmul.mubr.f32.vlgmr.msra.gmra.mrb[2].mxu0 %v290_v39 }
 0x317   :  { %v380_v59 = vpop.f32.mrb[2].mxu0 }
 0x318   :  { %v381_v60 = vadd.f32 %v515_v58, %v380_v59  ;;  %v691_v61 = vpop.f32.mrb[3].mxu0 }
 0x31a   :  { %v384_v62 = vmin.f32 %v381_v60, 0.0  ;;  %vm389_vm3 = vcmp.gt.f32.partialorder %v381_v60, 0.0 }
 0x31c   :  { %v385_v63 = vmul.f32 1.442695, %v384_v62 }
 0x31e   :  { %837 = vpow2.f32 %v385_v63 }
 0x328   :  { %v838_v2 = vpop.eup %837 }
 0x329   :  { %v516_v3 = vadd.f32 -1.0, %v838_v2 }
 0x32b   :  { %v388_v4 = vmul.f32 1.6732632, %v516_v3 }
 0x32d   :  { %v390_v5 = vsel %vm389_vm3, %v381_v60, %v388_v4 }
 0x32e   :  { %v391_v0 = vmul.f32 1.050701, %v390_v5 }
 0x330   :  { %725 = vmatmul.mubr.f32.vlgmr.msra.gmra.mrb[2].mxu1 %v391_v0 }
 0x403   :  { %v481_v7 = vpop.f32.mrb[2].mxu1 }
 0x404   :  { %v482_v8 = vadd.f32 %v517_v6, %v481_v7  ;;  %v726_v9 = vpop.f32.mrb[3].mxu1 }
 0x406   :  { %v485_v10 = vmin.f32 %v482_v8, 0.0  ;;  %vm490_vm4 = vcmp.gt.f32.partialorder %v482_v8, 0.0 }
 0x408   :  { %v486_v11 = vmul.f32 1.442695, %v485_v10 }
 0x40a   :  { %839 = vpow2.f32 %v486_v11 }
 0x414   :  { %v840_v12 = vpop.eup %839 }
 0x415   :  { %v518_v13 = vadd.f32 -1.0, %v840_v12 }
 0x417   :  { %v489_v14 = vmul.f32 1.6732632, %v518_v13 }
 0x419   :  { %v491_v15 = vsel %vm490_vm4, %v482_v8, %v489_v14 }
 0x41a   :  { %v492_v1 = vmul.f32 1.050701, %v491_v15 }
 0x41c   :  { %493 = vst [vmem:[#allocation10] sm:$0xff] %v492_v1 }
 0x41d   :  { %940 = shalt.err (!%p937_p8)
}
 0x41e   :  { %s941_s25 = scalar_lea.hbm %s1169_s9, 128 }
 0x41f   :  { %p942_p9 = scmp.ne.s32.totalorder %s1169_s9, %s941_s25  ;;  %p945_p10 = scmp.lt.u32.totalorder %s941_s25, %s1169_s9 }
 0x421   :  { %p947_p11 = pnand %p945_p10, %p942_p9 }
 0x423   :  { %950 = shalt.err (!%p947_p11)
}
 0x424   :  { %503 = dma.vmem_to_hbm [thread:$0]  %s501_s20, 128, %s1169_s9, [#allocation4]  }
 0x425   :  { %957 = dma.done.wait [#allocation4], 128  }
 0x426   :  { %958 = vsyncadd [#allocation4], 4294967168 }
 0x427   :  { %507 = vsyncpa [#allocation3], 1 }
 0x428   :  { %508 = vsyncpa [#allocation6], 1 }
 0x429   :  { %509 = vsyncpa [#allocation9], 1 }
 0x42a   :  { %510 = vsyncpa [#allocation4], 1 }

</bundles_post_ra>
